<compile_context>
chip_gen: v7x
topology: tpu7x:2x2x1
jax: 0.10.0
libtpu: 0.0.40
codegen_flags: <defaults>
</compile_context>

<pallas_src>
import math
import functools

import jax
import jax.numpy as jnp
from jax.experimental import pallas as pl
from jax.experimental.pallas import tpu as pltpu

EPS = 1e-6


# ----------------------------------------------------------------------------
# In-kernel helpers
# ----------------------------------------------------------------------------
def _layernorm(x, gamma, beta):
    """Matches the PyTorch module: unbiased std (D-1), denom = std + eps."""
    D = x.shape[-1]
    mean = jnp.mean(x, axis=-1, keepdims=True)
    diff = x - mean
    var = jnp.sum(diff * diff, axis=-1, keepdims=True) * (1.0 / (D - 1))
    inv = pl.reciprocal(jnp.sqrt(var) + EPS, approx=True)   # EUP slot
    return gamma * (diff * inv) + beta


# ----------------------------------------------------------------------------
# Fused encoder kernel: all layers + final LayerNorm, one batch element / step
# ----------------------------------------------------------------------------
def encoder_kernel(
    x_ref,
    wqkv_ref, bqkv_ref, wo_ref, bo_ref,
    ln1_g_ref, ln1_b_ref,
    w1_ref, b1_ref, w2_ref, b2_ref,
    ln2_g_ref, ln2_b_ref,
    fin_g_ref, fin_b_ref,
    o_ref,
    *, num_heads, num_layers,
):
    x = x_ref[0].astype(jnp.float32)              # (S, D), one batch element
    S, D = x.shape
    d_k = D // num_heads
    scale = 1.0 / math.sqrt(d_k)

    for l in range(num_layers):                   # static unroll; x stays in VMEM
        # ---- self-attention sublayer: x + Attn(LN(x)) ----
        xn = _layernorm(x, ln1_g_ref[l], ln1_b_ref[l])

        # fused QKV projection: one (S, D) x (D, 3D) matmul + one bias add
        qkv = (jnp.dot(xn, wqkv_ref[l], preferred_element_type=jnp.float32)
               + bqkv_ref[l])
        q, k, v = qkv[:, :D], qkv[:, D:2 * D], qkv[:, 2 * D:]

        # heads as leading batch dim -> batched einsums (flash-style layout)
        qh = jnp.stack([q[:, h * d_k:(h + 1) * d_k] for h in range(num_heads)], axis=0)
        kh = jnp.stack([k[:, h * d_k:(h + 1) * d_k] for h in range(num_heads)], axis=0)
        vh = jnp.stack([v[:, h * d_k:(h + 1) * d_k] for h in range(num_heads)], axis=0)

        scores = jnp.einsum("hqd,hkd->hqk", qh, kh,
                            preferred_element_type=jnp.float32) * scale
        scores = scores - jnp.max(scores, axis=-1, keepdims=True)
        p = jnp.exp(scores)
        p = p * pl.reciprocal(jnp.sum(p, axis=-1, keepdims=True), approx=True)
        ctx = jnp.einsum("hqk,hkd->hqd", p, vh,
                         preferred_element_type=jnp.float32)     # (H, S, d_k)

        # output projection with head-split W_o: sum_h ctx_h @ W_o[h]
        # (equivalent to concat(ctx_h, axis=-1) @ W_o, without the lane concat)
        attn_out = jnp.dot(ctx[0], wo_ref[l, 0], preferred_element_type=jnp.float32)
        for h in range(1, num_heads):
            attn_out = attn_out + jnp.dot(ctx[h], wo_ref[l, h],
                                          preferred_element_type=jnp.float32)
        x = x + attn_out + bo_ref[l]

        # ---- feed-forward sublayer: x + FFN(LN(x)) ----
        hn = _layernorm(x, ln2_g_ref[l], ln2_b_ref[l])
        f = jnp.maximum(
            jnp.dot(hn, w1_ref[l], preferred_element_type=jnp.float32) + b1_ref[l],
            0.0)
        x = x + jnp.dot(f, w2_ref[l], preferred_element_type=jnp.float32) + b2_ref[l]

    # final LayerNorm fused into the same kernel (no extra launch / HBM trip)
    o_ref[0] = _layernorm(x, fin_g_ref[...], fin_b_ref[...]).astype(o_ref.dtype)


# ----------------------------------------------------------------------------
# Wrapper: stack per-layer weights, single pallas_call, grid over batch
# ----------------------------------------------------------------------------
def encoder_forward(x, layer_params, final_gamma, final_beta, num_heads):
    B, S, D = x.shape
    L = len(layer_params)
    d_k = D // num_heads
    F = layer_params[0]["w1"].shape[1]

    # Pack per-layer weights along a leading layer axis (one-time, outside kernel)
    wqkv = jnp.stack([jnp.concatenate([p["wq"], p["wk"], p["wv"]], axis=1)
                      for p in layer_params])                        # (L, D, 3D)
    bqkv = jnp.stack([jnp.concatenate([p["bq"], p["bk"], p["bv"]], axis=1)
                      for p in layer_params])                        # (L, 1, 3D)
    wo = jnp.stack([p["wo"].reshape(num_heads, d_k, D)
                    for p in layer_params])                          # (L, H, d_k, D)
    bo = jnp.stack([p["bo"] for p in layer_params])                  # (L, 1, D)
    ln1_g = jnp.stack([p["ln1_g"] for p in layer_params])            # (L, 1, D)
    ln1_b = jnp.stack([p["ln1_b"] for p in layer_params])
    w1 = jnp.stack([p["w1"] for p in layer_params])                  # (L, D, F)
    b1 = jnp.stack([p["b1"] for p in layer_params])                  # (L, 1, F)
    w2 = jnp.stack([p["w2"] for p in layer_params])                  # (L, F, D)
    b2 = jnp.stack([p["b2"] for p in layer_params])                  # (L, 1, D)
    ln2_g = jnp.stack([p["ln2_g"] for p in layer_params])
    ln2_b = jnp.stack([p["ln2_b"] for p in layer_params])

    def const_spec(shape):
        n = len(shape)
        return pl.BlockSpec(shape, lambda b, _n=n: (0,) * _n)

    in_specs = [
        pl.BlockSpec((1, S, D), lambda b: (b, 0, 0)),        # x (per-batch block)
        const_spec((L, D, 3 * D)), const_spec((L, 1, 3 * D)),    # wqkv, bqkv
        const_spec((L, num_heads, d_k, D)), const_spec((L, 1, D)),  # wo, bo
        const_spec((L, 1, D)), const_spec((L, 1, D)),            # ln1 gamma/beta
        const_spec((L, D, F)), const_spec((L, 1, F)),            # w1, b1
        const_spec((L, F, D)), const_spec((L, 1, D)),            # w2, b2
        const_spec((L, 1, D)), const_spec((L, 1, D)),            # ln2 gamma/beta
        const_spec((1, D)), const_spec((1, D)),                  # final gamma/beta
    ]
    out_spec = pl.BlockSpec((1, S, D), lambda b: (b, 0, 0))

    return pl.pallas_call(
        functools.partial(encoder_kernel, num_heads=num_heads, num_layers=L),
        out_shape=jax.ShapeDtypeStruct((B, S, D), x.dtype),
        grid=(B,),
        in_specs=in_specs,
        out_specs=out_spec,
        compiler_params=pltpu.CompilerParams(
            dimension_semantics=("parallel",),          # both v7x TCs get a batch
            vmem_limit_bytes=32 * 1024 * 1024),
    )(x, wqkv, bqkv, wo, bo, ln1_g, ln1_b, w1, b1, w2, b2, ln2_g, ln2_b,
      final_gamma, final_beta)


# ----------------------------------------------------------------------------
# Deterministic parameter init (synthetic weights, not a checkpoint)
# ----------------------------------------------------------------------------
def init_params(key, num_layers, D, F):
    layer_params = []
    for _ in range(num_layers):
        keys = jax.random.split(key, 9)
        key = keys[0]
        lp = {
            "wq": 0.05 * jax.random.normal(keys[1], (D, D), jnp.float32),
            "bq": 0.01 * jax.random.normal(keys[2], (1, D), jnp.float32),
            "wk": 0.05 * jax.random.normal(keys[3], (D, D), jnp.float32),
            "bk": 0.01 * jax.random.normal(keys[4], (1, D), jnp.float32),
            "wv": 0.05 * jax.random.normal(keys[5], (D, D), jnp.float32),
            "bv": 0.01 * jax.random.normal(keys[6], (1, D), jnp.float32),
            "wo": 0.05 * jax.random.normal(keys[7], (D, D), jnp.float32),
            "bo": 0.01 * jax.random.normal(keys[8], (1, D), jnp.float32),
            "ln1_g": jnp.ones((1, D), jnp.float32),
            "ln1_b": jnp.zeros((1, D), jnp.float32),
            "ln2_g": jnp.ones((1, D), jnp.float32),
            "ln2_b": jnp.zeros((1, D), jnp.float32),
        }
        keys2 = jax.random.split(key, 5)
        key = keys2[0]
        lp["w1"] = 0.05 * jax.random.normal(keys2[1], (D, F), jnp.float32)
        lp["b1"] = 0.01 * jax.random.normal(keys2[2], (1, F), jnp.float32)
        lp["w2"] = 0.05 * jax.random.normal(keys2[3], (F, D), jnp.float32)
        lp["b2"] = 0.01 * jax.random.normal(keys2[4], (1, D), jnp.float32)
        layer_params.append(lp)
    final_gamma = jnp.ones((1, D), jnp.float32)
    final_beta = jnp.zeros((1, D), jnp.float32)
    return layer_params, final_gamma, final_beta


# ----------------------------------------------------------------------------
# Pure-JAX reference (mirrors the PyTorch forward, eval-mode dropout)
# ----------------------------------------------------------------------------
def ref_layernorm(x, g, b):
    D = x.shape[-1]
    mean = x.mean(-1, keepdims=True)
    diff = x - mean
    std = jnp.sqrt((diff * diff).sum(-1, keepdims=True) / (D - 1))
    return g * diff / (std + EPS) + b


def ref_encoder(x, layer_params, fg, fb, h):
    B, S, D = x.shape
    dk = D // h
    for p in layer_params:
        xn = ref_layernorm(x, p["ln1_g"], p["ln1_b"])
        q = xn @ p["wq"] + p["bq"]
        k = xn @ p["wk"] + p["bk"]
        v = xn @ p["wv"] + p["bv"]
        qh = q.reshape(B, S, h, dk).transpose(0, 2, 1, 3)
        kh = k.reshape(B, S, h, dk).transpose(0, 2, 1, 3)
        vh = v.reshape(B, S, h, dk).transpose(0, 2, 1, 3)
        sc = jnp.einsum("bhqd,bhkd->bhqk", qh, kh) / math.sqrt(dk)
        pa = jax.nn.softmax(sc, axis=-1)
        o = jnp.einsum("bhqk,bhkd->bhqd", pa, vh).transpose(0, 2, 1, 3).reshape(B, S, D)
        x = x + (o @ p["wo"] + p["bo"])
        xn2 = ref_layernorm(x, p["ln2_g"], p["ln2_b"])
        x = x + (jnp.maximum(xn2 @ p["w1"] + p["b1"], 0.0) @ p["w2"] + p["b2"])
    return ref_layernorm(x, fg, fb)


# ----------------------------------------------------------------------------
if __name__ == "__main__":
    B, S, D = 2, 8, 32          # batch, seq, embed_dim
    NUM_HEADS = 4
    FF_DIM = 64
    NUM_LAYERS = 2

    key = jax.random.PRNGKey(0)
    kx, kp = jax.random.split(key)
    x = jax.random.normal(kx, (B, S, D), jnp.float32)

    layer_params, fg, fb = init_params(kp, NUM_LAYERS, D, FF_DIM)

    out = encoder_forward(x, layer_params, fg, fb, NUM_HEADS)
    out = jax.block_until_ready(out)

    ref = ref_encoder(x, layer_params, fg, fb, NUM_HEADS)
    assert out.shape == (B, S, D)
    # Tolerance loosened from 1e-4: the kernel uses the EUP approximate
    # reciprocal (pl.reciprocal(approx=True)) for softmax / LayerNorm denominators
    # (anticipated in the perf review).
    assert jnp.allclose(out, ref, atol=2e-2, rtol=2e-2), (
        f"max abs diff {jnp.max(jnp.abs(out - ref))}")

    print("KERNEL_OK")
</pallas_src>

<mosaic_0001>
module attributes {stable_mosaic.version = 11 : i64} {
  func.func @encoder_kernel(%arg0: i32, %arg1: memref<1x8x32xf32, #tpu.memory_space<vmem>>, %arg2: memref<2x32x96xf32, #tpu.memory_space<vmem>>, %arg3: memref<2x1x96xf32, #tpu.memory_space<vmem>>, %arg4: memref<2x4x8x32xf32, #tpu.memory_space<vmem>>, %arg5: memref<2x1x32xf32, #tpu.memory_space<vmem>>, %arg6: memref<2x1x32xf32, #tpu.memory_space<vmem>>, %arg7: memref<2x1x32xf32, #tpu.memory_space<vmem>>, %arg8: memref<2x32x64xf32, #tpu.memory_space<vmem>>, %arg9: memref<2x1x64xf32, #tpu.memory_space<vmem>>, %arg10: memref<2x64x32xf32, #tpu.memory_space<vmem>>, %arg11: memref<2x1x32xf32, #tpu.memory_space<vmem>>, %arg12: memref<2x1x32xf32, #tpu.memory_space<vmem>>, %arg13: memref<2x1x32xf32, #tpu.memory_space<vmem>>, %arg14: memref<1x32xf32, #tpu.memory_space<vmem>>, %arg15: memref<1x32xf32, #tpu.memory_space<vmem>>, %arg16: memref<1x8x32xf32, #tpu.memory_space<vmem>>) attributes {dimension_semantics = [#tpu.dimension_semantics<parallel>], iteration_bounds = array<i64: 2>, scalar_prefetch = 0 : i64, scratch_operands = 0 : i64, tpu.core_type = #tpu.core_type<tc>, window_params = [{transform_indices = @transform_0, window_bounds = array<i64: 1, 8, 32>}, {pipeline_mode = #tpu.pipeline_mode<synchronous>, transform_indices = @transform_1, window_bounds = array<i64: 2, 32, 96>}, {pipeline_mode = #tpu.pipeline_mode<synchronous>, transform_indices = @transform_2, window_bounds = array<i64: 2, 1, 96>}, {pipeline_mode = #tpu.pipeline_mode<synchronous>, transform_indices = @transform_3, window_bounds = array<i64: 2, 4, 8, 32>}, {pipeline_mode = #tpu.pipeline_mode<synchronous>, transform_indices = @transform_4, window_bounds = array<i64: 2, 1, 32>}, {pipeline_mode = #tpu.pipeline_mode<synchronous>, transform_indices = @transform_5, window_bounds = array<i64: 2, 1, 32>}, {pipeline_mode = #tpu.pipeline_mode<synchronous>, transform_indices = @transform_6, window_bounds = array<i64: 2, 1, 32>}, {pipeline_mode = #tpu.pipeline_mode<synchronous>, transform_indices = @transform_7, window_bounds = array<i64: 2, 32, 64>}, {pipeline_mode = #tpu.pipeline_mode<synchronous>, transform_indices = @transform_8, window_bounds = array<i64: 2, 1, 64>}, {pipeline_mode = #tpu.pipeline_mode<synchronous>, transform_indices = @transform_9, window_bounds = array<i64: 2, 64, 32>}, {pipeline_mode = #tpu.pipeline_mode<synchronous>, transform_indices = @transform_10, window_bounds = array<i64: 2, 1, 32>}, {pipeline_mode = #tpu.pipeline_mode<synchronous>, transform_indices = @transform_11, window_bounds = array<i64: 2, 1, 32>}, {pipeline_mode = #tpu.pipeline_mode<synchronous>, transform_indices = @transform_12, window_bounds = array<i64: 2, 1, 32>}, {pipeline_mode = #tpu.pipeline_mode<synchronous>, transform_indices = @transform_13, window_bounds = array<i64: 1, 32>}, {pipeline_mode = #tpu.pipeline_mode<synchronous>, transform_indices = @transform_14, window_bounds = array<i64: 1, 32>}, {transform_indices = @transform_15, window_bounds = array<i64: 1, 8, 32>}]} {
    %c0 = arith.constant 0 : index
    %c0_0 = arith.constant 0 : index
    %c0_1 = arith.constant 0 : index
    %0 = vector.load %arg1[%c0, %c0_0, %c0_1] : memref<1x8x32xf32, #tpu.memory_space<vmem>>, vector<1x8x32xf32>
    %1 = vector.shape_cast %0 : vector<1x8x32xf32> to vector<8x32xf32>
    %c0_2 = arith.constant 0 : index
    %c0_3 = arith.constant 0 : index
    %c0_4 = arith.constant 0 : index
    %2 = vector.load %arg6[%c0_2, %c0_3, %c0_4] : memref<2x1x32xf32, #tpu.memory_space<vmem>>, vector<1x1x32xf32>
    %3 = vector.shape_cast %2 : vector<1x1x32xf32> to vector<1x32xf32>
    %c0_5 = arith.constant 0 : index
    %c0_6 = arith.constant 0 : index
    %c0_7 = arith.constant 0 : index
    %4 = vector.load %arg7[%c0_5, %c0_6, %c0_7] : memref<2x1x32xf32, #tpu.memory_space<vmem>>, vector<1x1x32xf32>
    %5 = vector.shape_cast %4 : vector<1x1x32xf32> to vector<1x32xf32>
    %cst = arith.constant dense<0.000000e+00> : vector<8xf32>
    %6 = vector.multi_reduction <add>, %1, %cst [1] : vector<8x32xf32> to vector<8xf32>
    %7 = vector.shape_cast %6 : vector<8xf32> to vector<8x1xf32>
    %cst_8 = arith.constant 3.200000e+01 : f32
    %8 = vector.broadcast %cst_8 : f32 to vector<8x1xf32>
    %9 = arith.divf %7, %8 : vector<8x1xf32>
    %10 = vector.broadcast %9 : vector<8x1xf32> to vector<8x32xf32>
    %11 = arith.subf %1, %10 : vector<8x32xf32>
    %12 = arith.mulf %11, %11 : vector<8x32xf32>
    %cst_9 = arith.constant dense<0.000000e+00> : vector<8xf32>
    %13 = vector.multi_reduction <add>, %12, %cst_9 [1] : vector<8x32xf32> to vector<8xf32>
    %14 = vector.shape_cast %13 : vector<8xf32> to vector<8x1xf32>
    %cst_10 = arith.constant 0.0322580636 : f32
    %15 = vector.broadcast %cst_10 : f32 to vector<8x1xf32>
    %16 = arith.mulf %14, %15 : vector<8x1xf32>
    %17 = math.sqrt %16 : vector<8x1xf32>
    %cst_11 = arith.constant 9.99999997E-7 : f32
    %18 = vector.broadcast %cst_11 : f32 to vector<8x1xf32>
    %19 = arith.addf %17, %18 : vector<8x1xf32>
    %20 = tpu.reciprocal %19 {approx = true} : vector<8x1xf32> -> vector<8x1xf32>
    %21 = vector.broadcast %20 : vector<8x1xf32> to vector<8x32xf32>
    %22 = arith.mulf %11, %21 : vector<8x32xf32>
    %23 = vector.broadcast %3 : vector<1x32xf32> to vector<8x32xf32>
    %24 = arith.mulf %23, %22 : vector<8x32xf32>
    %25 = vector.broadcast %5 : vector<1x32xf32> to vector<8x32xf32>
    %26 = arith.addf %24, %25 : vector<8x32xf32>
    %c0_12 = arith.constant 0 : index
    %c0_13 = arith.constant 0 : index
    %c0_14 = arith.constant 0 : index
    %27 = vector.load %arg2[%c0_12, %c0_13, %c0_14] : memref<2x32x96xf32, #tpu.memory_space<vmem>>, vector<1x32x96xf32>
    %28 = vector.shape_cast %27 : vector<1x32x96xf32> to vector<32x96xf32>
    %cst_15 = arith.constant dense<0.000000e+00> : vector<8x96xf32>
    %29 = tpu.matmul %26, %28, %cst_15 {dimension_numbers = #tpu.dot_dimension_numbers<[1], [0], [0], [1], [0, 0, 1, 1], [], []>} : vector<8x32xf32>, vector<32x96xf32>, vector<8x96xf32> -> vector<8x96xf32>
    %c0_16 = arith.constant 0 : index
    %c0_17 = arith.constant 0 : index
    %c0_18 = arith.constant 0 : index
    %30 = vector.load %arg3[%c0_16, %c0_17, %c0_18] : memref<2x1x96xf32, #tpu.memory_space<vmem>>, vector<1x1x96xf32>
    %31 = vector.shape_cast %30 : vector<1x1x96xf32> to vector<1x96xf32>
    %32 = vector.broadcast %31 : vector<1x96xf32> to vector<8x96xf32>
    %33 = arith.addf %29, %32 : vector<8x96xf32>
    %34 = vector.extract_strided_slice %33 {offsets = [0, 0], sizes = [8, 32], strides = [1, 1]} : vector<8x96xf32> to vector<8x32xf32>
    %35 = vector.extract_strided_slice %33 {offsets = [0, 32], sizes = [8, 32], strides = [1, 1]} : vector<8x96xf32> to vector<8x32xf32>
    %36 = vector.extract_strided_slice %33 {offsets = [0, 64], sizes = [8, 32], strides = [1, 1]} : vector<8x96xf32> to vector<8x32xf32>
    %37 = vector.extract_strided_slice %34 {offsets = [0, 0], sizes = [8, 8], strides = [1, 1]} : vector<8x32xf32> to vector<8x8xf32>
    %38 = vector.extract_strided_slice %34 {offsets = [0, 8], sizes = [8, 8], strides = [1, 1]} : vector<8x32xf32> to vector<8x8xf32>
    %39 = vector.extract_strided_slice %34 {offsets = [0, 16], sizes = [8, 8], strides = [1, 1]} : vector<8x32xf32> to vector<8x8xf32>
    %40 = vector.extract_strided_slice %34 {offsets = [0, 24], sizes = [8, 8], strides = [1, 1]} : vector<8x32xf32> to vector<8x8xf32>
    %41 = vector.shape_cast %37 : vector<8x8xf32> to vector<1x8x8xf32>
    %42 = vector.shape_cast %38 : vector<8x8xf32> to vector<1x8x8xf32>
    %43 = vector.shape_cast %39 : vector<8x8xf32> to vector<1x8x8xf32>
    %44 = vector.shape_cast %40 : vector<8x8xf32> to vector<1x8x8xf32>
    %45 = tpu.concatenate %41, %42, %43, %44 in 0 : vector<1x8x8xf32>, vector<1x8x8xf32>, vector<1x8x8xf32>, vector<1x8x8xf32> -> vector<4x8x8xf32>
    %46 = vector.extract_strided_slice %35 {offsets = [0, 0], sizes = [8, 8], strides = [1, 1]} : vector<8x32xf32> to vector<8x8xf32>
    %47 = vector.extract_strided_slice %35 {offsets = [0, 8], sizes = [8, 8], strides = [1, 1]} : vector<8x32xf32> to vector<8x8xf32>
    %48 = vector.extract_strided_slice %35 {offsets = [0, 16], sizes = [8, 8], strides = [1, 1]} : vector<8x32xf32> to vector<8x8xf32>
    %49 = vector.extract_strided_slice %35 {offsets = [0, 24], sizes = [8, 8], strides = [1, 1]} : vector<8x32xf32> to vector<8x8xf32>
    %50 = vector.shape_cast %46 : vector<8x8xf32> to vector<1x8x8xf32>
    %51 = vector.shape_cast %47 : vector<8x8xf32> to vector<1x8x8xf32>
    %52 = vector.shape_cast %48 : vector<8x8xf32> to vector<1x8x8xf32>
    %53 = vector.shape_cast %49 : vector<8x8xf32> to vector<1x8x8xf32>
    %54 = tpu.concatenate %50, %51, %52, %53 in 0 : vector<1x8x8xf32>, vector<1x8x8xf32>, vector<1x8x8xf32>, vector<1x8x8xf32> -> vector<4x8x8xf32>
    %55 = vector.extract_strided_slice %36 {offsets = [0, 0], sizes = [8, 8], strides = [1, 1]} : vector<8x32xf32> to vector<8x8xf32>
    %56 = vector.extract_strided_slice %36 {offsets = [0, 8], sizes = [8, 8], strides = [1, 1]} : vector<8x32xf32> to vector<8x8xf32>
    %57 = vector.extract_strided_slice %36 {offsets = [0, 16], sizes = [8, 8], strides = [1, 1]} : vector<8x32xf32> to vector<8x8xf32>
    %58 = vector.extract_strided_slice %36 {offsets = [0, 24], sizes = [8, 8], strides = [1, 1]} : vector<8x32xf32> to vector<8x8xf32>
    %59 = vector.shape_cast %55 : vector<8x8xf32> to vector<1x8x8xf32>
    %60 = vector.shape_cast %56 : vector<8x8xf32> to vector<1x8x8xf32>
    %61 = vector.shape_cast %57 : vector<8x8xf32> to vector<1x8x8xf32>
    %62 = vector.shape_cast %58 : vector<8x8xf32> to vector<1x8x8xf32>
    %63 = tpu.concatenate %59, %60, %61, %62 in 0 : vector<1x8x8xf32>, vector<1x8x8xf32>, vector<1x8x8xf32>, vector<1x8x8xf32> -> vector<4x8x8xf32>
    "tpu.trace_start"() <{level = 10 : i32, message = "hqd,hkd->hqk"}> : () -> ()
    %cst_19 = arith.constant dense<0.000000e+00> : vector<4x8x8xf32>
    %64 = tpu.matmul %45, %54, %cst_19 {dimension_numbers = #tpu.dot_dimension_numbers<[2], [2], [1], [1], [0, 0, 0, 1, 1, 1], [0], [0]>} : vector<4x8x8xf32>, vector<4x8x8xf32>, vector<4x8x8xf32> -> vector<4x8x8xf32>
    "tpu.trace_stop"() : () -> ()
    %cst_20 = arith.constant 0.353553385 : f32
    %65 = vector.broadcast %cst_20 : f32 to vector<4x8x8xf32>
    %66 = arith.mulf %64, %65 : vector<4x8x8xf32>
    %cst_21 = arith.constant dense<0xFF800000> : vector<4x8xf32>
    %67 = vector.multi_reduction <maximumf>, %66, %cst_21 [2] : vector<4x8x8xf32> to vector<4x8xf32>
    %68 = vector.shape_cast %67 : vector<4x8xf32> to vector<4x8x1xf32>
    %69 = vector.broadcast %68 : vector<4x8x1xf32> to vector<4x8x8xf32>
    %70 = arith.subf %66, %69 : vector<4x8x8xf32>
    %71 = math.exp %70 : vector<4x8x8xf32>
    %cst_22 = arith.constant dense<0.000000e+00> : vector<4x8xf32>
    %72 = vector.multi_reduction <add>, %71, %cst_22 [2] : vector<4x8x8xf32> to vector<4x8xf32>
    %73 = vector.shape_cast %72 : vector<4x8xf32> to vector<4x8x1xf32>
    %74 = tpu.reciprocal %73 {approx = true} : vector<4x8x1xf32> -> vector<4x8x1xf32>
    %75 = vector.broadcast %74 : vector<4x8x1xf32> to vector<4x8x8xf32>
    %76 = arith.mulf %71, %75 : vector<4x8x8xf32>
    "tpu.trace_start"() <{level = 10 : i32, message = "hqk,hkd->hqd"}> : () -> ()
    %cst_23 = arith.constant dense<0.000000e+00> : vector<4x8x8xf32>
    %77 = tpu.matmul %76, %63, %cst_23 {dimension_numbers = #tpu.dot_dimension_numbers<[2], [1], [1], [2], [0, 0, 0, 1, 1, 2], [0], [0]>} : vector<4x8x8xf32>, vector<4x8x8xf32>, vector<4x8x8xf32> -> vector<4x8x8xf32>
    "tpu.trace_stop"() : () -> ()
    %78 = vector.extract_strided_slice %77 {offsets = [0, 0, 0], sizes = [1, 8, 8], strides = [1, 1, 1]} : vector<4x8x8xf32> to vector<1x8x8xf32>
    %79 = vector.shape_cast %78 : vector<1x8x8xf32> to vector<8x8xf32>
    %c0_24 = arith.constant 0 : index
    %c0_25 = arith.constant 0 : index
    %c0_26 = arith.constant 0 : index
    %c0_27 = arith.constant 0 : index
    %80 = vector.load %arg4[%c0_24, %c0_25, %c0_26, %c0_27] : memref<2x4x8x32xf32, #tpu.memory_space<vmem>>, vector<1x1x8x32xf32>
    %81 = vector.shape_cast %80 : vector<1x1x8x32xf32> to vector<8x32xf32>
    %cst_28 = arith.constant dense<0.000000e+00> : vector<8x32xf32>
    %82 = tpu.matmul %79, %81, %cst_28 {dimension_numbers = #tpu.dot_dimension_numbers<[1], [0], [0], [1], [0, 0, 1, 1], [], []>} : vector<8x8xf32>, vector<8x32xf32>, vector<8x32xf32> -> vector<8x32xf32>
    %83 = vector.extract_strided_slice %77 {offsets = [1, 0, 0], sizes = [1, 8, 8], strides = [1, 1, 1]} : vector<4x8x8xf32> to vector<1x8x8xf32>
    %84 = vector.shape_cast %83 : vector<1x8x8xf32> to vector<8x8xf32>
    %c0_29 = arith.constant 0 : index
    %c1 = arith.constant 1 : index
    %c0_30 = arith.constant 0 : index
    %c0_31 = arith.constant 0 : index
    %85 = vector.load %arg4[%c0_29, %c1, %c0_30, %c0_31] : memref<2x4x8x32xf32, #tpu.memory_space<vmem>>, vector<1x1x8x32xf32>
    %86 = vector.shape_cast %85 : vector<1x1x8x32xf32> to vector<8x32xf32>
    %cst_32 = arith.constant dense<0.000000e+00> : vector<8x32xf32>
    %87 = tpu.matmul %84, %86, %cst_32 {dimension_numbers = #tpu.dot_dimension_numbers<[1], [0], [0], [1], [0, 0, 1, 1], [], []>} : vector<8x8xf32>, vector<8x32xf32>, vector<8x32xf32> -> vector<8x32xf32>
    %88 = arith.addf %82, %87 : vector<8x32xf32>
    %89 = vector.extract_strided_slice %77 {offsets = [2, 0, 0], sizes = [1, 8, 8], strides = [1, 1, 1]} : vector<4x8x8xf32> to vector<1x8x8xf32>
    %90 = vector.shape_cast %89 : vector<1x8x8xf32> to vector<8x8xf32>
    %c0_33 = arith.constant 0 : index
    %c2 = arith.constant 2 : index
    %c0_34 = arith.constant 0 : index
    %c0_35 = arith.constant 0 : index
    %91 = vector.load %arg4[%c0_33, %c2, %c0_34, %c0_35] : memref<2x4x8x32xf32, #tpu.memory_space<vmem>>, vector<1x1x8x32xf32>
    %92 = vector.shape_cast %91 : vector<1x1x8x32xf32> to vector<8x32xf32>
    %cst_36 = arith.constant dense<0.000000e+00> : vector<8x32xf32>
    %93 = tpu.matmul %90, %92, %cst_36 {dimension_numbers = #tpu.dot_dimension_numbers<[1], [0], [0], [1], [0, 0, 1, 1], [], []>} : vector<8x8xf32>, vector<8x32xf32>, vector<8x32xf32> -> vector<8x32xf32>
    %94 = arith.addf %88, %93 : vector<8x32xf32>
    %95 = vector.extract_strided_slice %77 {offsets = [3, 0, 0], sizes = [1, 8, 8], strides = [1, 1, 1]} : vector<4x8x8xf32> to vector<1x8x8xf32>
    %96 = vector.shape_cast %95 : vector<1x8x8xf32> to vector<8x8xf32>
    %c0_37 = arith.constant 0 : index
    %c3 = arith.constant 3 : index
    %c0_38 = arith.constant 0 : index
    %c0_39 = arith.constant 0 : index
    %97 = vector.load %arg4[%c0_37, %c3, %c0_38, %c0_39] : memref<2x4x8x32xf32, #tpu.memory_space<vmem>>, vector<1x1x8x32xf32>
    %98 = vector.shape_cast %97 : vector<1x1x8x32xf32> to vector<8x32xf32>
    %cst_40 = arith.constant dense<0.000000e+00> : vector<8x32xf32>
    %99 = tpu.matmul %96, %98, %cst_40 {dimension_numbers = #tpu.dot_dimension_numbers<[1], [0], [0], [1], [0, 0, 1, 1], [], []>} : vector<8x8xf32>, vector<8x32xf32>, vector<8x32xf32> -> vector<8x32xf32>
    %100 = arith.addf %94, %99 : vector<8x32xf32>
    %101 = arith.addf %1, %100 : vector<8x32xf32>
    %c0_41 = arith.constant 0 : index
    %c0_42 = arith.constant 0 : index
    %c0_43 = arith.constant 0 : index
    %102 = vector.load %arg5[%c0_41, %c0_42, %c0_43] : memref<2x1x32xf32, #tpu.memory_space<vmem>>, vector<1x1x32xf32>
    %103 = vector.shape_cast %102 : vector<1x1x32xf32> to vector<1x32xf32>
    %104 = vector.broadcast %103 : vector<1x32xf32> to vector<8x32xf32>
    %105 = arith.addf %101, %104 : vector<8x32xf32>
    %c0_44 = arith.constant 0 : index
    %c0_45 = arith.constant 0 : index
    %c0_46 = arith.constant 0 : index
    %106 = vector.load %arg12[%c0_44, %c0_45, %c0_46] : memref<2x1x32xf32, #tpu.memory_space<vmem>>, vector<1x1x32xf32>
    %107 = vector.shape_cast %106 : vector<1x1x32xf32> to vector<1x32xf32>
    %c0_47 = arith.constant 0 : index
    %c0_48 = arith.constant 0 : index
    %c0_49 = arith.constant 0 : index
    %108 = vector.load %arg13[%c0_47, %c0_48, %c0_49] : memref<2x1x32xf32, #tpu.memory_space<vmem>>, vector<1x1x32xf32>
    %109 = vector.shape_cast %108 : vector<1x1x32xf32> to vector<1x32xf32>
    %cst_50 = arith.constant dense<0.000000e+00> : vector<8xf32>
    %110 = vector.multi_reduction <add>, %105, %cst_50 [1] : vector<8x32xf32> to vector<8xf32>
    %111 = vector.shape_cast %110 : vector<8xf32> to vector<8x1xf32>
    %cst_51 = arith.constant 3.200000e+01 : f32
    %112 = vector.broadcast %cst_51 : f32 to vector<8x1xf32>
    %113 = arith.divf %111, %112 : vector<8x1xf32>
    %114 = vector.broadcast %113 : vector<8x1xf32> to vector<8x32xf32>
    %115 = arith.subf %105, %114 : vector<8x32xf32>
    %116 = arith.mulf %115, %115 : vector<8x32xf32>
    %cst_52 = arith.constant dense<0.000000e+00> : vector<8xf32>
    %117 = vector.multi_reduction <add>, %116, %cst_52 [1] : vector<8x32xf32> to vector<8xf32>
    %118 = vector.shape_cast %117 : vector<8xf32> to vector<8x1xf32>
    %cst_53 = arith.constant 0.0322580636 : f32
    %119 = vector.broadcast %cst_53 : f32 to vector<8x1xf32>
    %120 = arith.mulf %118, %119 : vector<8x1xf32>
    %121 = math.sqrt %120 : vector<8x1xf32>
    %cst_54 = arith.constant 9.99999997E-7 : f32
    %122 = vector.broadcast %cst_54 : f32 to vector<8x1xf32>
    %123 = arith.addf %121, %122 : vector<8x1xf32>
    %124 = tpu.reciprocal %123 {approx = true} : vector<8x1xf32> -> vector<8x1xf32>
    %125 = vector.broadcast %124 : vector<8x1xf32> to vector<8x32xf32>
    %126 = arith.mulf %115, %125 : vector<8x32xf32>
    %127 = vector.broadcast %107 : vector<1x32xf32> to vector<8x32xf32>
    %128 = arith.mulf %127, %126 : vector<8x32xf32>
    %129 = vector.broadcast %109 : vector<1x32xf32> to vector<8x32xf32>
    %130 = arith.addf %128, %129 : vector<8x32xf32>
    %c0_55 = arith.constant 0 : index
    %c0_56 = arith.constant 0 : index
    %c0_57 = arith.constant 0 : index
    %131 = vector.load %arg8[%c0_55, %c0_56, %c0_57] : memref<2x32x64xf32, #tpu.memory_space<vmem>>, vector<1x32x64xf32>
    %132 = vector.shape_cast %131 : vector<1x32x64xf32> to vector<32x64xf32>
    %cst_58 = arith.constant dense<0.000000e+00> : vector<8x64xf32>
    %133 = tpu.matmul %130, %132, %cst_58 {dimension_numbers = #tpu.dot_dimension_numbers<[1], [0], [0], [1], [0, 0, 1, 1], [], []>} : vector<8x32xf32>, vector<32x64xf32>, vector<8x64xf32> -> vector<8x64xf32>
    %c0_59 = arith.constant 0 : index
    %c0_60 = arith.constant 0 : index
    %c0_61 = arith.constant 0 : index
    %134 = vector.load %arg9[%c0_59, %c0_60, %c0_61] : memref<2x1x64xf32, #tpu.memory_space<vmem>>, vector<1x1x64xf32>
    %135 = vector.shape_cast %134 : vector<1x1x64xf32> to vector<1x64xf32>
    %136 = vector.broadcast %135 : vector<1x64xf32> to vector<8x64xf32>
    %137 = arith.addf %133, %136 : vector<8x64xf32>
    %cst_62 = arith.constant 0.000000e+00 : f32
    %138 = vector.broadcast %cst_62 : f32 to vector<8x64xf32>
    %139 = arith.maximumf %137, %138 : vector<8x64xf32>
    %c0_63 = arith.constant 0 : index
    %c0_64 = arith.constant 0 : index
    %c0_65 = arith.constant 0 : index
    %140 = vector.load %arg10[%c0_63, %c0_64, %c0_65] : memref<2x64x32xf32, #tpu.memory_space<vmem>>, vector<1x64x32xf32>
    %141 = vector.shape_cast %140 : vector<1x64x32xf32> to vector<64x32xf32>
    %cst_66 = arith.constant dense<0.000000e+00> : vector<8x32xf32>
    %142 = tpu.matmul %139, %141, %cst_66 {dimension_numbers = #tpu.dot_dimension_numbers<[1], [0], [0], [1], [0, 0, 1, 1], [], []>} : vector<8x64xf32>, vector<64x32xf32>, vector<8x32xf32> -> vector<8x32xf32>
    %143 = arith.addf %105, %142 : vector<8x32xf32>
    %c0_67 = arith.constant 0 : index
    %c0_68 = arith.constant 0 : index
    %c0_69 = arith.constant 0 : index
    %144 = vector.load %arg11[%c0_67, %c0_68, %c0_69] : memref<2x1x32xf32, #tpu.memory_space<vmem>>, vector<1x1x32xf32>
    %145 = vector.shape_cast %144 : vector<1x1x32xf32> to vector<1x32xf32>
    %146 = vector.broadcast %145 : vector<1x32xf32> to vector<8x32xf32>
    %147 = arith.addf %143, %146 : vector<8x32xf32>
    %c1_70 = arith.constant 1 : index
    %c0_71 = arith.constant 0 : index
    %c0_72 = arith.constant 0 : index
    %148 = vector.load %arg6[%c1_70, %c0_71, %c0_72] : memref<2x1x32xf32, #tpu.memory_space<vmem>>, vector<1x1x32xf32>
    %149 = vector.shape_cast %148 : vector<1x1x32xf32> to vector<1x32xf32>
    %c1_73 = arith.constant 1 : index
    %c0_74 = arith.constant 0 : index
    %c0_75 = arith.constant 0 : index
    %150 = vector.load %arg7[%c1_73, %c0_74, %c0_75] : memref<2x1x32xf32, #tpu.memory_space<vmem>>, vector<1x1x32xf32>
    %151 = vector.shape_cast %150 : vector<1x1x32xf32> to vector<1x32xf32>
    %cst_76 = arith.constant dense<0.000000e+00> : vector<8xf32>
    %152 = vector.multi_reduction <add>, %147, %cst_76 [1] : vector<8x32xf32> to vector<8xf32>
    %153 = vector.shape_cast %152 : vector<8xf32> to vector<8x1xf32>
    %cst_77 = arith.constant 3.200000e+01 : f32
    %154 = vector.broadcast %cst_77 : f32 to vector<8x1xf32>
    %155 = arith.divf %153, %154 : vector<8x1xf32>
    %156 = vector.broadcast %155 : vector<8x1xf32> to vector<8x32xf32>
    %157 = arith.subf %147, %156 : vector<8x32xf32>
    %158 = arith.mulf %157, %157 : vector<8x32xf32>
    %cst_78 = arith.constant dense<0.000000e+00> : vector<8xf32>
    %159 = vector.multi_reduction <add>, %158, %cst_78 [1] : vector<8x32xf32> to vector<8xf32>
    %160 = vector.shape_cast %159 : vector<8xf32> to vector<8x1xf32>
    %cst_79 = arith.constant 0.0322580636 : f32
    %161 = vector.broadcast %cst_79 : f32 to vector<8x1xf32>
    %162 = arith.mulf %160, %161 : vector<8x1xf32>
    %163 = math.sqrt %162 : vector<8x1xf32>
    %cst_80 = arith.constant 9.99999997E-7 : f32
    %164 = vector.broadcast %cst_80 : f32 to vector<8x1xf32>
    %165 = arith.addf %163, %164 : vector<8x1xf32>
    %166 = tpu.reciprocal %165 {approx = true} : vector<8x1xf32> -> vector<8x1xf32>
    %167 = vector.broadcast %166 : vector<8x1xf32> to vector<8x32xf32>
    %168 = arith.mulf %157, %167 : vector<8x32xf32>
    %169 = vector.broadcast %149 : vector<1x32xf32> to vector<8x32xf32>
    %170 = arith.mulf %169, %168 : vector<8x32xf32>
    %171 = vector.broadcast %151 : vector<1x32xf32> to vector<8x32xf32>
    %172 = arith.addf %170, %171 : vector<8x32xf32>
    %c1_81 = arith.constant 1 : index
    %c0_82 = arith.constant 0 : index
    %c0_83 = arith.constant 0 : index
    %173 = vector.load %arg2[%c1_81, %c0_82, %c0_83] : memref<2x32x96xf32, #tpu.memory_space<vmem>>, vector<1x32x96xf32>
    %174 = vector.shape_cast %173 : vector<1x32x96xf32> to vector<32x96xf32>
    %cst_84 = arith.constant dense<0.000000e+00> : vector<8x96xf32>
    %175 = tpu.matmul %172, %174, %cst_84 {dimension_numbers = #tpu.dot_dimension_numbers<[1], [0], [0], [1], [0, 0, 1, 1], [], []>} : vector<8x32xf32>, vector<32x96xf32>, vector<8x96xf32> -> vector<8x96xf32>
    %c1_85 = arith.constant 1 : index
    %c0_86 = arith.constant 0 : index
    %c0_87 = arith.constant 0 : index
    %176 = vector.load %arg3[%c1_85, %c0_86, %c0_87] : memref<2x1x96xf32, #tpu.memory_space<vmem>>, vector<1x1x96xf32>
    %177 = vector.shape_cast %176 : vector<1x1x96xf32> to vector<1x96xf32>
    %178 = vector.broadcast %177 : vector<1x96xf32> to vector<8x96xf32>
    %179 = arith.addf %175, %178 : vector<8x96xf32>
    %180 = vector.extract_strided_slice %179 {offsets = [0, 0], sizes = [8, 32], strides = [1, 1]} : vector<8x96xf32> to vector<8x32xf32>
    %181 = vector.extract_strided_slice %179 {offsets = [0, 32], sizes = [8, 32], strides = [1, 1]} : vector<8x96xf32> to vector<8x32xf32>
    %182 = vector.extract_strided_slice %179 {offsets = [0, 64], sizes = [8, 32], strides = [1, 1]} : vector<8x96xf32> to vector<8x32xf32>
    %183 = vector.extract_strided_slice %180 {offsets = [0, 0], sizes = [8, 8], strides = [1, 1]} : vector<8x32xf32> to vector<8x8xf32>
    %184 = vector.extract_strided_slice %180 {offsets = [0, 8], sizes = [8, 8], strides = [1, 1]} : vector<8x32xf32> to vector<8x8xf32>
    %185 = vector.extract_strided_slice %180 {offsets = [0, 16], sizes = [8, 8], strides = [1, 1]} : vector<8x32xf32> to vector<8x8xf32>
    %186 = vector.extract_strided_slice %180 {offsets = [0, 24], sizes = [8, 8], strides = [1, 1]} : vector<8x32xf32> to vector<8x8xf32>
    %187 = vector.shape_cast %183 : vector<8x8xf32> to vector<1x8x8xf32>
    %188 = vector.shape_cast %184 : vector<8x8xf32> to vector<1x8x8xf32>
    %189 = vector.shape_cast %185 : vector<8x8xf32> to vector<1x8x8xf32>
    %190 = vector.shape_cast %186 : vector<8x8xf32> to vector<1x8x8xf32>
    %191 = tpu.concatenate %187, %188, %189, %190 in 0 : vector<1x8x8xf32>, vector<1x8x8xf32>, vector<1x8x8xf32>, vector<1x8x8xf32> -> vector<4x8x8xf32>
    %192 = vector.extract_strided_slice %181 {offsets = [0, 0], sizes = [8, 8], strides = [1, 1]} : vector<8x32xf32> to vector<8x8xf32>
    %193 = vector.extract_strided_slice %181 {offsets = [0, 8], sizes = [8, 8], strides = [1, 1]} : vector<8x32xf32> to vector<8x8xf32>
    %194 = vector.extract_strided_slice %181 {offsets = [0, 16], sizes = [8, 8], strides = [1, 1]} : vector<8x32xf32> to vector<8x8xf32>
    %195 = vector.extract_strided_slice %181 {offsets = [0, 24], sizes = [8, 8], strides = [1, 1]} : vector<8x32xf32> to vector<8x8xf32>
    %196 = vector.shape_cast %192 : vector<8x8xf32> to vector<1x8x8xf32>
    %197 = vector.shape_cast %193 : vector<8x8xf32> to vector<1x8x8xf32>
    %198 = vector.shape_cast %194 : vector<8x8xf32> to vector<1x8x8xf32>
    %199 = vector.shape_cast %195 : vector<8x8xf32> to vector<1x8x8xf32>
    %200 = tpu.concatenate %196, %197, %198, %199 in 0 : vector<1x8x8xf32>, vector<1x8x8xf32>, vector<1x8x8xf32>, vector<1x8x8xf32> -> vector<4x8x8xf32>
    %201 = vector.extract_strided_slice %182 {offsets = [0, 0], sizes = [8, 8], strides = [1, 1]} : vector<8x32xf32> to vector<8x8xf32>
    %202 = vector.extract_strided_slice %182 {offsets = [0, 8], sizes = [8, 8], strides = [1, 1]} : vector<8x32xf32> to vector<8x8xf32>
    %203 = vector.extract_strided_slice %182 {offsets = [0, 16], sizes = [8, 8], strides = [1, 1]} : vector<8x32xf32> to vector<8x8xf32>
    %204 = vector.extract_strided_slice %182 {offsets = [0, 24], sizes = [8, 8], strides = [1, 1]} : vector<8x32xf32> to vector<8x8xf32>
    %205 = vector.shape_cast %201 : vector<8x8xf32> to vector<1x8x8xf32>
    %206 = vector.shape_cast %202 : vector<8x8xf32> to vector<1x8x8xf32>
    %207 = vector.shape_cast %203 : vector<8x8xf32> to vector<1x8x8xf32>
    %208 = vector.shape_cast %204 : vector<8x8xf32> to vector<1x8x8xf32>
    %209 = tpu.concatenate %205, %206, %207, %208 in 0 : vector<1x8x8xf32>, vector<1x8x8xf32>, vector<1x8x8xf32>, vector<1x8x8xf32> -> vector<4x8x8xf32>
    "tpu.trace_start"() <{level = 10 : i32, message = "hqd,hkd->hqk"}> : () -> ()
    %cst_88 = arith.constant dense<0.000000e+00> : vector<4x8x8xf32>
    %210 = tpu.matmul %191, %200, %cst_88 {dimension_numbers = #tpu.dot_dimension_numbers<[2], [2], [1], [1], [0, 0, 0, 1, 1, 1], [0], [0]>} : vector<4x8x8xf32>, vector<4x8x8xf32>, vector<4x8x8xf32> -> vector<4x8x8xf32>
    "tpu.trace_stop"() : () -> ()
    %cst_89 = arith.constant 0.353553385 : f32
    %211 = vector.broadcast %cst_89 : f32 to vector<4x8x8xf32>
    %212 = arith.mulf %210, %211 : vector<4x8x8xf32>
    %cst_90 = arith.constant dense<0xFF800000> : vector<4x8xf32>
    %213 = vector.multi_reduction <maximumf>, %212, %cst_90 [2] : vector<4x8x8xf32> to vector<4x8xf32>
    %214 = vector.shape_cast %213 : vector<4x8xf32> to vector<4x8x1xf32>
    %215 = vector.broadcast %214 : vector<4x8x1xf32> to vector<4x8x8xf32>
    %216 = arith.subf %212, %215 : vector<4x8x8xf32>
    %217 = math.exp %216 : vector<4x8x8xf32>
    %cst_91 = arith.constant dense<0.000000e+00> : vector<4x8xf32>
    %218 = vector.multi_reduction <add>, %217, %cst_91 [2] : vector<4x8x8xf32> to vector<4x8xf32>
    %219 = vector.shape_cast %218 : vector<4x8xf32> to vector<4x8x1xf32>
    %220 = tpu.reciprocal %219 {approx = true} : vector<4x8x1xf32> -> vector<4x8x1xf32>
    %221 = vector.broadcast %220 : vector<4x8x1xf32> to vector<4x8x8xf32>
    %222 = arith.mulf %217, %221 : vector<4x8x8xf32>
    "tpu.trace_start"() <{level = 10 : i32, message = "hqk,hkd->hqd"}> : () -> ()
    %cst_92 = arith.constant dense<0.000000e+00> : vector<4x8x8xf32>
    %223 = tpu.matmul %222, %209, %cst_92 {dimension_numbers = #tpu.dot_dimension_numbers<[2], [1], [1], [2], [0, 0, 0, 1, 1, 2], [0], [0]>} : vector<4x8x8xf32>, vector<4x8x8xf32>, vector<4x8x8xf32> -> vector<4x8x8xf32>
    "tpu.trace_stop"() : () -> ()
    %224 = vector.extract_strided_slice %223 {offsets = [0, 0, 0], sizes = [1, 8, 8], strides = [1, 1, 1]} : vector<4x8x8xf32> to vector<1x8x8xf32>
    %225 = vector.shape_cast %224 : vector<1x8x8xf32> to vector<8x8xf32>
    %c1_93 = arith.constant 1 : index
    %c0_94 = arith.constant 0 : index
    %c0_95 = arith.constant 0 : index
    %c0_96 = arith.constant 0 : index
    %226 = vector.load %arg4[%c1_93, %c0_94, %c0_95, %c0_96] : memref<2x4x8x32xf32, #tpu.memory_space<vmem>>, vector<1x1x8x32xf32>
    %227 = vector.shape_cast %226 : vector<1x1x8x32xf32> to vector<8x32xf32>
    %cst_97 = arith.constant dense<0.000000e+00> : vector<8x32xf32>
    %228 = tpu.matmul %225, %227, %cst_97 {dimension_numbers = #tpu.dot_dimension_numbers<[1], [0], [0], [1], [0, 0, 1, 1], [], []>} : vector<8x8xf32>, vector<8x32xf32>, vector<8x32xf32> -> vector<8x32xf32>
    %229 = vector.extract_strided_slice %223 {offsets = [1, 0, 0], sizes = [1, 8, 8], strides = [1, 1, 1]} : vector<4x8x8xf32> to vector<1x8x8xf32>
    %230 = vector.shape_cast %229 : vector<1x8x8xf32> to vector<8x8xf32>
    %c1_98 = arith.constant 1 : index
    %c1_99 = arith.constant 1 : index
    %c0_100 = arith.constant 0 : index
    %c0_101 = arith.constant 0 : index
    %231 = vector.load %arg4[%c1_98, %c1_99, %c0_100, %c0_101] : memref<2x4x8x32xf32, #tpu.memory_space<vmem>>, vector<1x1x8x32xf32>
    %232 = vector.shape_cast %231 : vector<1x1x8x32xf32> to vector<8x32xf32>
    %cst_102 = arith.constant dense<0.000000e+00> : vector<8x32xf32>
    %233 = tpu.matmul %230, %232, %cst_102 {dimension_numbers = #tpu.dot_dimension_numbers<[1], [0], [0], [1], [0, 0, 1, 1], [], []>} : vector<8x8xf32>, vector<8x32xf32>, vector<8x32xf32> -> vector<8x32xf32>
    %234 = arith.addf %228, %233 : vector<8x32xf32>
    %235 = vector.extract_strided_slice %223 {offsets = [2, 0, 0], sizes = [1, 8, 8], strides = [1, 1, 1]} : vector<4x8x8xf32> to vector<1x8x8xf32>
    %236 = vector.shape_cast %235 : vector<1x8x8xf32> to vector<8x8xf32>
    %c1_103 = arith.constant 1 : index
    %c2_104 = arith.constant 2 : index
    %c0_105 = arith.constant 0 : index
    %c0_106 = arith.constant 0 : index
    %237 = vector.load %arg4[%c1_103, %c2_104, %c0_105, %c0_106] : memref<2x4x8x32xf32, #tpu.memory_space<vmem>>, vector<1x1x8x32xf32>
    %238 = vector.shape_cast %237 : vector<1x1x8x32xf32> to vector<8x32xf32>
    %cst_107 = arith.constant dense<0.000000e+00> : vector<8x32xf32>
    %239 = tpu.matmul %236, %238, %cst_107 {dimension_numbers = #tpu.dot_dimension_numbers<[1], [0], [0], [1], [0, 0, 1, 1], [], []>} : vector<8x8xf32>, vector<8x32xf32>, vector<8x32xf32> -> vector<8x32xf32>
    %240 = arith.addf %234, %239 : vector<8x32xf32>
    %241 = vector.extract_strided_slice %223 {offsets = [3, 0, 0], sizes = [1, 8, 8], strides = [1, 1, 1]} : vector<4x8x8xf32> to vector<1x8x8xf32>
    %242 = vector.shape_cast %241 : vector<1x8x8xf32> to vector<8x8xf32>
    %c1_108 = arith.constant 1 : index
    %c3_109 = arith.constant 3 : index
    %c0_110 = arith.constant 0 : index
    %c0_111 = arith.constant 0 : index
    %243 = vector.load %arg4[%c1_108, %c3_109, %c0_110, %c0_111] : memref<2x4x8x32xf32, #tpu.memory_space<vmem>>, vector<1x1x8x32xf32>
    %244 = vector.shape_cast %243 : vector<1x1x8x32xf32> to vector<8x32xf32>
    %cst_112 = arith.constant dense<0.000000e+00> : vector<8x32xf32>
    %245 = tpu.matmul %242, %244, %cst_112 {dimension_numbers = #tpu.dot_dimension_numbers<[1], [0], [0], [1], [0, 0, 1, 1], [], []>} : vector<8x8xf32>, vector<8x32xf32>, vector<8x32xf32> -> vector<8x32xf32>
    %246 = arith.addf %240, %245 : vector<8x32xf32>
    %247 = arith.addf %147, %246 : vector<8x32xf32>
    %c1_113 = arith.constant 1 : index
    %c0_114 = arith.constant 0 : index
    %c0_115 = arith.constant 0 : index
    %248 = vector.load %arg5[%c1_113, %c0_114, %c0_115] : memref<2x1x32xf32, #tpu.memory_space<vmem>>, vector<1x1x32xf32>
    %249 = vector.shape_cast %248 : vector<1x1x32xf32> to vector<1x32xf32>
    %250 = vector.broadcast %249 : vector<1x32xf32> to vector<8x32xf32>
    %251 = arith.addf %247, %250 : vector<8x32xf32>
    %c1_116 = arith.constant 1 : index
    %c0_117 = arith.constant 0 : index
    %c0_118 = arith.constant 0 : index
    %252 = vector.load %arg12[%c1_116, %c0_117, %c0_118] : memref<2x1x32xf32, #tpu.memory_space<vmem>>, vector<1x1x32xf32>
    %253 = vector.shape_cast %252 : vector<1x1x32xf32> to vector<1x32xf32>
    %c1_119 = arith.constant 1 : index
    %c0_120 = arith.constant 0 : index
    %c0_121 = arith.constant 0 : index
    %254 = vector.load %arg13[%c1_119, %c0_120, %c0_121] : memref<2x1x32xf32, #tpu.memory_space<vmem>>, vector<1x1x32xf32>
    %255 = vector.shape_cast %254 : vector<1x1x32xf32> to vector<1x32xf32>
    %cst_122 = arith.constant dense<0.000000e+00> : vector<8xf32>
    %256 = vector.multi_reduction <add>, %251, %cst_122 [1] : vector<8x32xf32> to vector<8xf32>
    %257 = vector.shape_cast %256 : vector<8xf32> to vector<8x1xf32>
    %cst_123 = arith.constant 3.200000e+01 : f32
    %258 = vector.broadcast %cst_123 : f32 to vector<8x1xf32>
    %259 = arith.divf %257, %258 : vector<8x1xf32>
    %260 = vector.broadcast %259 : vector<8x1xf32> to vector<8x32xf32>
    %261 = arith.subf %251, %260 : vector<8x32xf32>
    %262 = arith.mulf %261, %261 : vector<8x32xf32>
    %cst_124 = arith.constant dense<0.000000e+00> : vector<8xf32>
    %263 = vector.multi_reduction <add>, %262, %cst_124 [1] : vector<8x32xf32> to vector<8xf32>
    %264 = vector.shape_cast %263 : vector<8xf32> to vector<8x1xf32>
    %cst_125 = arith.constant 0.0322580636 : f32
    %265 = vector.broadcast %cst_125 : f32 to vector<8x1xf32>
    %266 = arith.mulf %264, %265 : vector<8x1xf32>
    %267 = math.sqrt %266 : vector<8x1xf32>
    %cst_126 = arith.constant 9.99999997E-7 : f32
    %268 = vector.broadcast %cst_126 : f32 to vector<8x1xf32>
    %269 = arith.addf %267, %268 : vector<8x1xf32>
    %270 = tpu.reciprocal %269 {approx = true} : vector<8x1xf32> -> vector<8x1xf32>
    %271 = vector.broadcast %270 : vector<8x1xf32> to vector<8x32xf32>
    %272 = arith.mulf %261, %271 : vector<8x32xf32>
    %273 = vector.broadcast %253 : vector<1x32xf32> to vector<8x32xf32>
    %274 = arith.mulf %273, %272 : vector<8x32xf32>
    %275 = vector.broadcast %255 : vector<1x32xf32> to vector<8x32xf32>
    %276 = arith.addf %274, %275 : vector<8x32xf32>
    %c1_127 = arith.constant 1 : index
    %c0_128 = arith.constant 0 : index
    %c0_129 = arith.constant 0 : index
    %277 = vector.load %arg8[%c1_127, %c0_128, %c0_129] : memref<2x32x64xf32, #tpu.memory_space<vmem>>, vector<1x32x64xf32>
    %278 = vector.shape_cast %277 : vector<1x32x64xf32> to vector<32x64xf32>
    %cst_130 = arith.constant dense<0.000000e+00> : vector<8x64xf32>
    %279 = tpu.matmul %276, %278, %cst_130 {dimension_numbers = #tpu.dot_dimension_numbers<[1], [0], [0], [1], [0, 0, 1, 1], [], []>} : vector<8x32xf32>, vector<32x64xf32>, vector<8x64xf32> -> vector<8x64xf32>
    %c1_131 = arith.constant 1 : index
    %c0_132 = arith.constant 0 : index
    %c0_133 = arith.constant 0 : index
    %280 = vector.load %arg9[%c1_131, %c0_132, %c0_133] : memref<2x1x64xf32, #tpu.memory_space<vmem>>, vector<1x1x64xf32>
    %281 = vector.shape_cast %280 : vector<1x1x64xf32> to vector<1x64xf32>
    %282 = vector.broadcast %281 : vector<1x64xf32> to vector<8x64xf32>
    %283 = arith.addf %279, %282 : vector<8x64xf32>
    %cst_134 = arith.constant 0.000000e+00 : f32
    %284 = vector.broadcast %cst_134 : f32 to vector<8x64xf32>
    %285 = arith.maximumf %283, %284 : vector<8x64xf32>
    %c1_135 = arith.constant 1 : index
    %c0_136 = arith.constant 0 : index
    %c0_137 = arith.constant 0 : index
    %286 = vector.load %arg10[%c1_135, %c0_136, %c0_137] : memref<2x64x32xf32, #tpu.memory_space<vmem>>, vector<1x64x32xf32>
    %287 = vector.shape_cast %286 : vector<1x64x32xf32> to vector<64x32xf32>
    %cst_138 = arith.constant dense<0.000000e+00> : vector<8x32xf32>
    %288 = tpu.matmul %285, %287, %cst_138 {dimension_numbers = #tpu.dot_dimension_numbers<[1], [0], [0], [1], [0, 0, 1, 1], [], []>} : vector<8x64xf32>, vector<64x32xf32>, vector<8x32xf32> -> vector<8x32xf32>
    %289 = arith.addf %251, %288 : vector<8x32xf32>
    %c1_139 = arith.constant 1 : index
    %c0_140 = arith.constant 0 : index
    %c0_141 = arith.constant 0 : index
    %290 = vector.load %arg11[%c1_139, %c0_140, %c0_141] : memref<2x1x32xf32, #tpu.memory_space<vmem>>, vector<1x1x32xf32>
    %291 = vector.shape_cast %290 : vector<1x1x32xf32> to vector<1x32xf32>
    %292 = vector.broadcast %291 : vector<1x32xf32> to vector<8x32xf32>
    %293 = arith.addf %289, %292 : vector<8x32xf32>
    %c0_142 = arith.constant 0 : index
    %c0_143 = arith.constant 0 : index
    %294 = vector.load %arg14[%c0_142, %c0_143] : memref<1x32xf32, #tpu.memory_space<vmem>>, vector<1x32xf32>
    %c0_144 = arith.constant 0 : index
    %c0_145 = arith.constant 0 : index
    %295 = vector.load %arg15[%c0_144, %c0_145] : memref<1x32xf32, #tpu.memory_space<vmem>>, vector<1x32xf32>
    %cst_146 = arith.constant dense<0.000000e+00> : vector<8xf32>
    %296 = vector.multi_reduction <add>, %293, %cst_146 [1] : vector<8x32xf32> to vector<8xf32>
    %297 = vector.shape_cast %296 : vector<8xf32> to vector<8x1xf32>
    %cst_147 = arith.constant 3.200000e+01 : f32
    %298 = vector.broadcast %cst_147 : f32 to vector<8x1xf32>
    %299 = arith.divf %297, %298 : vector<8x1xf32>
    %300 = vector.broadcast %299 : vector<8x1xf32> to vector<8x32xf32>
    %301 = arith.subf %293, %300 : vector<8x32xf32>
    %302 = arith.mulf %301, %301 : vector<8x32xf32>
    %cst_148 = arith.constant dense<0.000000e+00> : vector<8xf32>
    %303 = vector.multi_reduction <add>, %302, %cst_148 [1] : vector<8x32xf32> to vector<8xf32>
    %304 = vector.shape_cast %303 : vector<8xf32> to vector<8x1xf32>
    %cst_149 = arith.constant 0.0322580636 : f32
    %305 = vector.broadcast %cst_149 : f32 to vector<8x1xf32>
    %306 = arith.mulf %304, %305 : vector<8x1xf32>
    %307 = math.sqrt %306 : vector<8x1xf32>
    %cst_150 = arith.constant 9.99999997E-7 : f32
    %308 = vector.broadcast %cst_150 : f32 to vector<8x1xf32>
    %309 = arith.addf %307, %308 : vector<8x1xf32>
    %310 = tpu.reciprocal %309 {approx = true} : vector<8x1xf32> -> vector<8x1xf32>
    %311 = vector.broadcast %310 : vector<8x1xf32> to vector<8x32xf32>
    %312 = arith.mulf %301, %311 : vector<8x32xf32>
    %313 = vector.broadcast %294 : vector<1x32xf32> to vector<8x32xf32>
    %314 = arith.mulf %313, %312 : vector<8x32xf32>
    %315 = vector.broadcast %295 : vector<1x32xf32> to vector<8x32xf32>
    %316 = arith.addf %314, %315 : vector<8x32xf32>
    %c0_151 = arith.constant 0 : index
    %c0_152 = arith.constant 0 : index
    %c0_153 = arith.constant 0 : index
    %317 = vector.load %arg16[%c0_151, %c0_152, %c0_153] : memref<1x8x32xf32, #tpu.memory_space<vmem>>, vector<1x8x32xf32>
    %318 = vector.shape_cast %317 : vector<1x8x32xf32> to vector<8x32xf32>
    %319 = vector.shape_cast %316 : vector<8x32xf32> to vector<1x8x32xf32>
    tpu.vector_store %arg16[%c0_151, %c0_152, %c0_153], %319 {strides = array<i32>} : memref<1x8x32xf32, #tpu.memory_space<vmem>>, vector<1x8x32xf32>,
    return
  }
  func.func @transform_0(%arg0: i32) -> (i32, i32, i32) {
    %c0_i32 = arith.constant 0 : i32
    %c0_i32_0 = arith.constant 0 : i32
    %c0_i32_1 = arith.constant 0 : i32
    return %arg0, %c0_i32, %c0_i32_0 : i32, i32, i32
  }
  func.func @transform_1(%arg0: i32) -> (i32, i32, i32) {
    %c0_i32 = arith.constant 0 : i32
    %c0_i32_0 = arith.constant 0 : i32
    %c0_i32_1 = arith.constant 0 : i32
    %c0_i32_2 = arith.constant 0 : i32
    return %c0_i32, %c0_i32_0, %c0_i32_1 : i32, i32, i32
  }
  func.func @transform_2(%arg0: i32) -> (i32, i32, i32) {
    %c0_i32 = arith.constant 0 : i32
    %c0_i32_0 = arith.constant 0 : i32
    %c0_i32_1 = arith.constant 0 : i32
    %c0_i32_2 = arith.constant 0 : i32
    return %c0_i32, %c0_i32_0, %c0_i32_1 : i32, i32, i32
  }
  func.func @transform_3(%arg0: i32) -> (i32, i32, i32, i32) {
    %c0_i32 = arith.constant 0 : i32
    %c0_i32_0 = arith.constant 0 : i32
    %c0_i32_1 = arith.constant 0 : i32
    %c0_i32_2 = arith.constant 0 : i32
    %c0_i32_3 = arith.constant 0 : i32
    return %c0_i32, %c0_i32_0, %c0_i32_1, %c0_i32_2 : i32, i32, i32, i32
  }
  func.func @transform_4(%arg0: i32) -> (i32, i32, i32) {
    %c0_i32 = arith.constant 0 : i32
    %c0_i32_0 = arith.constant 0 : i32
    %c0_i32_1 = arith.constant 0 : i32
    %c0_i32_2 = arith.constant 0 : i32
    return %c0_i32, %c0_i32_0, %c0_i32_1 : i32, i32, i32
  }
  func.func @transform_5(%arg0: i32) -> (i32, i32, i32) {
    %c0_i32 = arith.constant 0 : i32
    %c0_i32_0 = arith.constant 0 : i32
    %c0_i32_1 = arith.constant 0 : i32
    %c0_i32_2 = arith.constant 0 : i32
    return %c0_i32, %c0_i32_0, %c0_i32_1 : i32, i32, i32
  }
  func.func @transform_6(%arg0: i32) -> (i32, i32, i32) {
    %c0_i32 = arith.constant 0 : i32
    %c0_i32_0 = arith.constant 0 : i32
    %c0_i32_1 = arith.constant 0 : i32
    %c0_i32_2 = arith.constant 0 : i32
    return %c0_i32, %c0_i32_0, %c0_i32_1 : i32, i32, i32
  }
  func.func @transform_7(%arg0: i32) -> (i32, i32, i32) {
    %c0_i32 = arith.constant 0 : i32
    %c0_i32_0 = arith.constant 0 : i32
    %c0_i32_1 = arith.constant 0 : i32
    %c0_i32_2 = arith.constant 0 : i32
    return %c0_i32, %c0_i32_0, %c0_i32_1 : i32, i32, i32
  }
  func.func @transform_8(%arg0: i32) -> (i32, i32, i32) {
    %c0_i32 = arith.constant 0 : i32
    %c0_i32_0 = arith.constant 0 : i32
    %c0_i32_1 = arith.constant 0 : i32
    %c0_i32_2 = arith.constant 0 : i32
    return %c0_i32, %c0_i32_0, %c0_i32_1 : i32, i32, i32
  }
  func.func @transform_9(%arg0: i32) -> (i32, i32, i32) {
    %c0_i32 = arith.constant 0 : i32
    %c0_i32_0 = arith.constant 0 : i32
    %c0_i32_1 = arith.constant 0 : i32
    %c0_i32_2 = arith.constant 0 : i32
    return %c0_i32, %c0_i32_0, %c0_i32_1 : i32, i32, i32
  }
  func.func @transform_10(%arg0: i32) -> (i32, i32, i32) {
    %c0_i32 = arith.constant 0 : i32
    %c0_i32_0 = arith.constant 0 : i32
    %c0_i32_1 = arith.constant 0 : i32
    %c0_i32_2 = arith.constant 0 : i32
    return %c0_i32, %c0_i32_0, %c0_i32_1 : i32, i32, i32
  }
  func.func @transform_11(%arg0: i32) -> (i32, i32, i32) {
    %c0_i32 = arith.constant 0 : i32
    %c0_i32_0 = arith.constant 0 : i32
    %c0_i32_1 = arith.constant 0 : i32
    %c0_i32_2 = arith.constant 0 : i32
    return %c0_i32, %c0_i32_0, %c0_i32_1 : i32, i32, i32
  }
  func.func @transform_12(%arg0: i32) -> (i32, i32, i32) {
    %c0_i32 = arith.constant 0 : i32
    %c0_i32_0 = arith.constant 0 : i32
    %c0_i32_1 = arith.constant 0 : i32
    %c0_i32_2 = arith.constant 0 : i32
    return %c0_i32, %c0_i32_0, %c0_i32_1 : i32, i32, i32
  }
  func.func @transform_13(%arg0: i32) -> (i32, i32) {
    %c0_i32 = arith.constant 0 : i32
    %c0_i32_0 = arith.constant 0 : i32
    %c0_i32_1 = arith.constant 0 : i32
    return %c0_i32, %c0_i32_0 : i32, i32
  }
  func.func @transform_14(%arg0: i32) -> (i32, i32) {
    %c0_i32 = arith.constant 0 : i32
    %c0_i32_0 = arith.constant 0 : i32
    %c0_i32_1 = arith.constant 0 : i32
    return %c0_i32, %c0_i32_0 : i32, i32
  }
  func.func @transform_15(%arg0: i32) -> (i32, i32, i32) {
    %c0_i32 = arith.constant 0 : i32
    %c0_i32_0 = arith.constant 0 : i32
    %c0_i32_1 = arith.constant 0 : i32
    return %arg0, %c0_i32, %c0_i32_0 : i32, i32, i32
  }
}

</mosaic_0001>

<bundles_post_ra>
// kernel: tpu_custom_call.1
= control target key start
LH: loop header
LB: loop body
LE: loop exit
PB: predicated region body
PF: predicated region fallthrough
CT: control target
= control target key end

     0   :  { %s4556_s0 = inlined_call_operand.hbm [shape: f32[2,8,32], index: 0, kind: input, shape index: {}]   ;;  %s4557_s1 = inlined_call_operand.vmem [shape: f32[2,32,96], index: 1, kind: input, shape index: {}]   ;;  %s4558_s2 = inlined_call_operand.vmem [shape: f32[2,1,96], index: 2, kind: input, shape index: {}]   ;;  %s4559_s3 = inlined_call_operand.vmem [shape: f32[2,4,8,32], index: 3, kind: input, shape index: {}]   ;;  %s4560_s4 = inlined_call_operand.vmem [shape: f32[2,1,32], index: 4, kind: input, shape index: {}]   ;;  %s4561_s5 = inlined_call_operand.vmem [shape: f32[2,1,32], index: 5, kind: input, shape index: {}]   ;;  %s4562_s6 = inlined_call_operand.vmem [shape: f32[2,1,32], index: 6, kind: input, shape index: {}]   ;;  %s4563_s7 = inlined_call_operand.vmem [shape: f32[2,32,64], index: 7, kind: input, shape index: {}]   ;;  %s4564_s8 = inlined_call_operand.vmem [shape: f32[2,1,64], index: 8, kind: input, shape index: {}]   ;;  %s4565_s9 = inlined_call_operand.vmem [shape: f32[2,64,32], index: 9, kind: input, shape index: {}]   ;;  %s4566_s10 = inlined_call_operand.vmem [shape: f32[2,1,32], index: 10, kind: input, shape index: {}]   ;;  %s4567_s11 = inlined_call_operand.vmem [shape: f32[2,1,32], index: 11, kind: input, shape index: {}]   ;;  %s4568_s12 = inlined_call_operand.vmem [shape: f32[2,1,32], index: 12, kind: input, shape index: {}]   ;;  %s4569_s13 = inlined_call_operand.vmem [shape: f32[1,32], index: 13, kind: input, shape index: {}]   ;;  %s4570_s14 = inlined_call_operand.vmem [shape: f32[1,32], index: 14, kind: input, shape index: {}]   ;;  %s4571_s15 = inlined_call_operand.hbm [shape: f32[2,8,32], index: 15, kind: output, shape index: {}]  }
   0x1   :  { %4584 = sst [smem:[#allocation12_spill]] %s4556_s0 }
   0x2   :  { %4585 = sst [smem:[#allocation13_spill]] %s4557_s1 }
   0x3   :  { %4586 = sst [smem:[#allocation14_spill]] %s4570_s14 }
   0x4   :  { %4587 = sst [smem:[#allocation15_spill]] %s4571_s15 }
   0x5   :  { %20 = vsyncpa [#allocation3], 0 }
   0x6   :  { %22 = vsyncpa [#allocation3 + $0x1], 0 }
   0x7   :  { %23 = vsyncpa [#allocation4], 0 }
   0x8   :  { %25 = vsyncpa [#allocation4 + $0x1], 0  ;;  %s3985_s18 = smov 0   ;;  %s3987_s19 = smov 0  }
   0x9   :  { %s3989_s20 = smov 0   ;;  %s3991_s21 = smov 0  }
   0xa LB: > { %4588 = sst [smem:[#allocation8_spill]] %s3881_s18  ;;  %s4006_s22 = sadd.s32 4294967295, %s3893_s21   ;;  %s3893_s21 = sphi %s3991_s21, %s4611_s21   ;;  %s3889_s20 = sphi %s3989_s20, %s4613_s20   ;;  %s3885_s19 = sphi %s3987_s19, %s4615_s19   ;;  %s3881_s18 = sphi %s3985_s18, %s4614_s18  }
   0xb   : > { %4589 = sst [smem:[#allocation9_spill]] %s3889_s20  ;;  %s3256_s23 = sadd.s32 4294967294, %s3893_s21  }
   0xc   : > { %s4010_s24 = sadd.s32 1, %s3893_s21   ;;  %s38_s25 = sadd.s32 1, %s3889_s20 }
   0xd   : > { %4590 = sst [smem:[#allocation10_spill]] %s4010_s24  ;;  %s35_s26 = ssub.s32 %s3893_s21, %s4010_s24 }
   0xe   : > { %p45_p0 = scmp.ne.s32.totalorder %s3889_s20, %s3885_s19  ;;  %p36_p1 = scmp.eq.s32.totalorder %s35_s26, 0 }
   0xf   : > { %p46_p2 = scmp.eq.s32.totalorder %s3893_s21, 0  ;;  %p51_p3 = scmp.ne.s32.totalorder %s3885_s19, %s3881_s18 }
  0x10   : > { %p52_p4 = scmp.eq.s32.totalorder %s4006_s22, 0  ;;  %p369_p7 = scmp.eq.s32.totalorder %s4006_s22, 1 }
  0x11   : > { %s4022_s27 = scalar_select %p36_p1, %s3889_s20, %s38_s25  }
  0x12   : > { %p4024_p5 = por %p46_p2, %p45_p0  ;;  %p4028_p6 = por %p52_p4, %p51_p3 }
  0x13   : > { %4591 = sst [smem:[#allocation11_spill]] %s4022_s27  ;;  %p375_p8 = scmp.eq.s32.totalorder %s3256_s23, 1 }
  0x14   : > { %p3703_p10 = scmp.lt.s32.totalorder %s3893_s21, 2  ;;  %p4035_p11 = por %p369_p7, %p45_p0 }
  0x15   : > { %p4039_p12 = por %p375_p8, %p51_p3  ;;  %s437_s17 = sand.u32 1, %s3889_s20  }
  0x16   : > { %s4594_s30 = scalar_select %p4035_p11, 1, 0 }
  0x17   : > { %s4595_s16 = scalar_select %p4039_p12, 1, 0 }
  0x18   : > { %s3260_s25 = sshll.u32 %s3893_s21, 7  ;;  %s3259_s26 = sshll.u32 %s437_s17, 3 }
  0x19   : > { %s4596_s0 = sld [smem:[#allocation12_spill]]  ;;  %s441_s23 = scalar_lea.vmem [#allocation2], %s3259_s26 }
  0x1a   : > { %s448_s15 = sshll.u32 %s441_s23, 4  ;;  %p4052_p13 = pnand %p3703_p10, %p4024_p5  ;;  %s4056_s15 = int_to_ptr.vmem [resolvable:$true] %s448_s15 }
  0x1b   : > { %s438_s24 = scalar_lea.sflag [#allocation3], %s437_s17 }
  0x1c   : > { %p3799_p3 = pneg %p4052_p13 }
  0x1f   : > { %s4048_s18 = scalar_lea.hbm %s4596_s0, %s3260_s25  ;;  %s3802_s26 = scalar_lea.hbm %s4596_s0, 256 }
  0x20   : > { %s3797_s27 = scalar_lea.hbm %s4048_s18, 128  ;;  %p3803_p5 = scmp.lt.u32.totalorder %s4048_s18, %s4596_s0 }
  0x21   : > { %p3798_p2 = scmp.ne.s32.totalorder %s4048_s18, %s3797_s27  ;;  %p3804_p8 = scmp.lt.u32.totalorder %s3802_s26, %s3797_s27 }
  0x22   : > { %p3806_p9 = scmp.lt.u32.totalorder %s3797_s27, %s4048_s18 }
  0x23   : > { %p3800_p4 = pnand %p3799_p3, %p3798_p2  ;;  %p3805_p10 = por %p3804_p8, %p3803_p5 }
  0x25   : > { %p3801_p7 = pneg %p3800_p4  ;;  %p3807_p0 = por %p3806_p9, %p3805_p10 }
  0x27   : > { %p3808_p1 = pnand %p3807_p0, %p3801_p7 }
  0x29   : > { %3811 = shalt.err (!%p3808_p1)
}
  0x2a   : > { %s3812_s17 = scalar_lea.vmem %s4056_s15, 128  ;;  %s3895_s28 = smov [#allocation2]  }
  0x2b   : > { %p3813_p2 = scmp.ne.s32.totalorder %s4056_s15, %s3812_s17  ;;  %s3817_s25 = sshll.u32 %s3895_s28, 4  ;;  %s3818_s25 = int_to_ptr.vmem [resolvable:$false] %s3817_s25 }
  0x2c   : > { %s3819_s20 = scalar_lea.vmem %s3818_s25, 256  ;;  %p3820_p11 = scmp.lt.s32.totalorder %s4056_s15, %s3818_s25 }
  0x2d   : > { %p3815_p4 = pnand %p3813_p2, %p3799_p3  ;;  %p3821_p5 = scmp.lt.s32.totalorder %s3819_s20, %s3812_s17 }
  0x2f   : > { %p3816_p12 = pneg %p3815_p4  ;;  %p3822_p8 = por %p3821_p5, %p3820_p11 }
  0x31   : > { %p3823_p9 = pnand %p3822_p8, %p3816_p12 }
  0x33   : > { %3826 = shalt.err (!%p3823_p9)
}
  0x34   : > { %3698 = dma.hbm_to_vmem [thread:$0]  (!%p4052_p13), %s4048_s18, 128, %s4056_s15, %s438_s24  }
  0x35   : > { %p4598_p0 = scmp.lt.s32.totalorder %s3893_s21, 3  ;;  %p4599_p1 = scmp.ge.s32.totalorder %s3893_s21, 1 }
  0x37   : > { %p454_p3 = pnand %p4599_p1, %p4598_p0 }
  0x38   : > { %s4090_s27 = sand.u32 (!%p454_p3), 1, %s3885_s19  }
  0x39   : > { %457 = sbr.rel (%p454_p3) target bundleno = 5409 (0x1521), region = 80  ;;  %s4578_s26 = sshll.u32 (!%p454_p3), %s4090_s27, 3 }
  0x3a   : > { %s460_s23 = scalar_lea.sflag (!%p454_p3), [#allocation3], %s4090_s27  ;;  %s463_s14 = scalar_lea.vmem (!%p454_p3), [#allocation2], %s4578_s26 }
  0x40   : > { %3872 = dma.done.wait (%p4028_p6), %s460_s23, 128  }
  0x41   : > { %3874 = vsyncadd (%p4028_p6), %s460_s23, 4294967168  ;;  %vm513_vm0 = vcmask 261120   ;;  %v4100_v0 = vld [vmem:[%s463_s14] sm:$0xff]  ;;  %s4600_s1 = sld [smem:[#allocation13_spill]]  ;;  %v3896_v10 = vmov 0.0|0.0   ;;  %vm3897_vm1 = vmmov 0  }
  0x42   : > { %v514_v1 = vsel %vm513_vm0, %v4100_v0, 0.0  ;;  %3643 = vmatprep.subr.bf16.mxu0 %v3896_v10  ;;  %v3898_v13 = vmov 0.0   ;;  %v3264_v24 = vld [vmem:[%s4561_s5] ss:$0 sm:$0xff]  ;;  %s4583_s17 = smov 104   ;;  %s3900_s28 = smov 120  }
  0x43   : > { %515 = vadd.xlane.f32.xlu0 %v514_v1  ;;  %3449 = vmatprep.mubr.msk.f32.mxu0 %vm3897_vm1, %v3898_v13  ;;  %v3265_v26 = vld [vmem:[%s4562_s6] ss:$0 sm:$0xff]  ;;  %s3901_s25 = smov 112   ;;  %s4581_s20 = smov 96   ;;  %vm642_vm4 = vcmask 64512   ;;  %vm1736_vm7 = vcmask 523264  }
  0x44   : > { %3457 = vmatprep.subr.mxu1 %v3898_v13  ;;  %3459 = vmatprep.mubr.msk.f32.mxu1 %vm3897_vm1, %v3898_v13  ;;  %v3266_v29 = vld [vmem:[%s4558_s2] ss:$0 sm:$0xff]  ;;  %s4579_s23 = smov 64   ;;  %s4601_s14 = smov 104  }
  0x45   : > { %s4604_s26 = sld [smem:[#allocation14_spill]]  ;;  %s3352_s18 = sshll.u32 %s4006_s22, 7 }
  0x46   : > { %s4606_s0 = sld [smem:[#allocation15_spill]]  ;;  %p4607_p11 = scmp.ne.s32.totalorder %s4594_s30, 0 }
  0x47   : > { %v549_v7 = vld [vmem:[%s4600_s1] sm:$0xff]  ;;  %v550_v8 = vld [vmem:[%s4600_s1 + $0x8] sm:$0xff]  ;;  %v551_v9 = vld [vmem:[%s4600_s1 + $0x10] sm:$0xff]  ;;  %s3904_s22 = smov [#allocation5]  }
  0x48   : > { %v3644_v11 = vpack.c.bf16 %v550_v8, %v549_v7  ;;  %v552_v12 = vld [vmem:[%s4600_s1 + $0x18] sm:$0xff] }
  0x49   : > { %v3647_v14 = vpack.c.bf16 %v552_v12, %v551_v9 }
  0x4a   : > { %3645 = vmatpush3.bf16.msra.mxu0 %v3644_v11 }
  0x4b   : > { %3646 = vmatprep.subr.bf16.mxu0 %v3896_v10 }
  0x4e   : > { %3648 = vmatpush3.bf16.msra.mxu0 %v3647_v14 }
  0x4f   : > { %3452 = vmatprep.subr.mxu0 %v3898_v13 }
  0xd0   : > { %v516_v2 = vpop.xlane.xlu0 %515 }
  0xd1   : > { %v518_v3 = vmul.f32 0.03125, %v516_v2 }
  0xd3   : > { %v519_v4 = vsub.f32 %v4100_v0, %v518_v3 }
  0xd5   : > { %v520_v5 = vmul.f32 %v519_v4, %v519_v4 }
  0xd7   : > { %v521_v6 = vsel %vm513_vm0, %v520_v5, 0.0 }
  0xd8   : > { %522 = vadd.xlane.f32.xlu0 %v521_v6 }
 0x165   : > { %v523_v15 = vpop.xlane.xlu0 %522 }
 0x166   : > { %v524_v16 = vmul.f32 0.032258064, %v523_v15 }
 0x168   : > { %3745 = vrsqrt.f32 %v524_v16  ;;  %vm527_vm2 = vcmp.eq.f32.partialorder %v524_v16, inf  ;;  %v530_v19 = vand.u32 2147483648, %v524_v16  ;;  %vm529_vm3 = vcmp.eq.f32.partialorder %v524_v16, 0.0 }
 0x172   : > { %v3746_v17 = vpop.eup %3745 }
 0x173   : > { %v526_v18 = vmul.f32 %v3746_v17, %v524_v16 }
 0x175   : > { %v528_v20 = vsel %vm527_vm2, %v524_v16, %v526_v18 }
 0x176   : > { %v531_v21 = vsel %vm529_vm3, %v530_v19, %v528_v20 }
 0x177   : > { %v532_v22 = vadd.f32 1e-06, %v531_v21 }
 0x179   : > { %3747 = vrcp.f32 %v532_v22 }
 0x183   : > { %v3748_v23 = vpop.eup %3747 }
 0x184   : > { %v534_v25 = vmul.f32 %v3748_v23, %v519_v4 }
 0x186   : > { %v541_v27 = vmul.f32 %v3264_v24, %v534_v25 }
 0x188   : > { %v548_v28 = vadd.f32 %v3265_v26, %v541_v27 }
 0x18a   : > { %3450 = vmatmul.mubr.msk.f32.vlgmr.msra.gmra.mrb[0].mxu0 %vm513_vm0, %v548_v28 }
 0x18b   : > { %3454 = vmatprep.mubr.msk.f32.mxu0 %vm3897_vm1, %v3898_v13 }
 0x25d   : > { %v629_v30 = vpop.f32.mrb[0].mxu0 }
 0x25e   : > { %v630_v31 = vadd.f32 %v3266_v29, %v629_v30  ;;  %v3451_v32 = vpop.f32.mrb[1].mxu0 }
 0x25f   : > { %v3280_v32 = vld [vmem:[%s4559_s3 + $0x8] sm:$0xff] }
 0x260   : > { %638 = vrot.lane.b32.xlu0 %v630_v31, %s4583_s17  ;;  %634 = vrot.lane.b32.xlu1 %v630_v31, %s3900_s28  ;;  %s4602_s17 = smov 96  }
 0x264   : > { %636 = vrot.lane.b32.xlu1 %v630_v31, %s3901_s25 }
 0x268   : > { %640 = vrot.lane.b32.xlu1 %v630_v31, %s4581_s20 }
 0x2d2   : > { %v4142_v33 = vpop.permute.xlu1 %634  ;;  %v4150_v35 = vpop.permute.xlu0 %638 }
 0x2d3   : > { %717 = vrot.lane.b32.xlu1 %v4142_v33, %s4581_s20 }
 0x2d6   : > { %v4146_v34 = vpop.permute.xlu1 %636 }
 0x2d7   : > { %793 = vrot.lane.b32.xlu1 %v4146_v34, %s4581_s20 }
 0x2da   : > { %v641_v36 = vpop.permute.xlu1 %640 }
 0x2db   : > { %869 = vrot.lane.b32.xlu1 %v4150_v35, %s4581_s20  ;;  %3453 = vmatpush3.xpose.msk.msra.mxu0 %vm642_vm4, %v641_v36  ;;  %v3283_v36 = vld [vmem:[%s4559_s3 + $0x10] sm:$0xff]  ;;  %s4605_s20 = sshll.u32 %s4090_s27, 3 }
 0x2dc   : > { %3462 = vmatprep.subr.mxu0 %v3898_v13 }
 0x2de   : > { %3455 = vmatmul.mubr.msk.f32.vlgmr.msra.gmra.mrb[2].mxu0 %vm642_vm4, %v630_v31 }
 0x2df   : > { %3464 = vmatprep.mubr.msk.f32.mxu0 %vm3897_vm1, %v3898_v13 }
 0x345   : > { %v718_v37 = vpop.permute.xlu1 %717 }
 0x346   : > { %3458 = vmatpush3.xpose.msk.msra.mxu1 %vm642_vm4, %v718_v37 }
 0x347   : > { %3467 = vmatprep.subr.mxu1 %v3898_v13 }
 0x349   : > { %3460 = vmatmul.mubr.msk.f32.vlgmr.msra.gmra.mrb[0].mxu1 %vm642_vm4, %v4142_v33  ;;  %v794_v38 = vpop.permute.xlu1 %793 }
 0x34a   : > { %3463 = vmatpush3.xpose.msk.msra.mxu0 %vm642_vm4, %v794_v38  ;;  %3469 = vmatprep.mubr.msk.f32.mxu1 %vm3897_vm1, %v3898_v13 }
 0x34b   : > { %3472 = vmatprep.subr.mxu0 %v3898_v13 }
 0x34d   : > { %3465 = vmatmul.mubr.msk.f32.vlgmr.msra.gmra.mrb[4].mxu0 %vm642_vm4, %v4146_v34  ;;  %v870_v39 = vpop.permute.xlu1 %869 }
 0x34e   : > { %3468 = vmatpush3.xpose.msk.msra.mxu1 %vm642_vm4, %v870_v39  ;;  %3474 = vmatprep.mubr.msk.f32.mxu0 %vm3897_vm1, %v3898_v13 }
 0x34f   : > { %3477 = vmatprep.subr.mxu1 %v3898_v13 }
 0x351   : > { %3470 = vmatmul.mubr.msk.f32.vlgmr.msra.gmra.mrb[2].mxu1 %vm642_vm4, %v4150_v35 }
 0x352   : > { %3479 = vmatprep.mubr.msk.f32.mxu1 %vm3897_vm1, %v3898_v13 }
 0x3b1   : > { %v713_v40 = vpop.f32.mrb[2].mxu0 }
 0x3b2   : > { %v945_v41 = vmul.f32 0.35355338, %v713_v40  ;;  %v3456_v42 = vpop.f32.mrb[3].mxu0 }
 0x3b4   : > { %v949_v43 = vsel %vm642_vm4, %v945_v41, -inf }
 0x3b5   : > { %950 = vmax.xlane.f32.xlu1 %v949_v43 }
 0x41c   : > { %v789_v44 = vpop.f32.mrb[0].mxu1 }
 0x41d   : > { %v946_v45 = vmul.f32 0.35355338, %v789_v44  ;;  %v3461_v46 = vpop.f32.mrb[1].mxu1 }
 0x41f   : > { %v952_v47 = vsel %vm642_vm4, %v946_v45, -inf }
 0x420   : > { %953 = vmax.xlane.f32.xlu0 %v952_v47  ;;  %v865_v48 = vpop.f32.mrb[4].mxu0 }
 0x421   : > { %v947_v49 = vmul.f32 0.35355338, %v865_v48  ;;  %v3466_v50 = vpop.f32.mrb[5].mxu0 }
 0x423   : > { %v955_v51 = vsel %vm642_vm4, %v947_v49, -inf }
 0x424   : > { %v941_v52 = vpop.f32.mrb[2].mxu1  ;;  %956 = vmax.xlane.f32.xlu1 %v955_v51 }
 0x425   : > { %v948_v53 = vmul.f32 0.35355338, %v941_v52  ;;  %v3471_v54 = vpop.f32.mrb[3].mxu1 }
 0x426   : > { %v3287_v54 = vld [vmem:[%s4560_s4] ss:$0 sm:$0xff] }
 0x427   : > { %v958_v55 = vsel %vm642_vm4, %v948_v53, -inf }
 0x428   : > { %959 = vmax.xlane.f32.xlu0 %v958_v55 }
 0x435   : > { %993 = vrot.lane.b32.xlu1 %v630_v31, %s4579_s23  ;;  %v1297_v31 = vld [vmem:[%s4559_s3] sm:$0xff] }
 0x442   : > { %v951_v56 = vpop.xlane.xlu1 %950 }
 0x443   : > { %v961_v57 = vsub.f32 %v945_v41, %v951_v56 }
 0x445   : > { %v965_v58 = vmul.f32 1.442695, %v961_v57 }
 0x447   : > { %3749 = vpow2.f32 %v965_v58 }
 0x451   : > { %v3750_v59 = vpop.eup %3749 }
 0x452   : > { %v973_v60 = vsel %vm642_vm4, %v3750_v59, 0.0 }
 0x459   : > { %974 = vadd.xlane.f32.xlu1 %v973_v60 }
 0x4ad   : > { %v954_v61 = vpop.xlane.xlu0 %953 }
 0x4ae   : > { %v962_v62 = vsub.f32 %v946_v45, %v954_v61 }
 0x4b0   : > { %v967_v63 = vmul.f32 1.442695, %v962_v62 }
 0x4b1   : > { %v957_v1 = vpop.xlane.xlu1 %956 }
 0x4b2   : > { %3751 = vpow2.f32 %v967_v63  ;;  %v963_v2 = vsub.f32 %v947_v49, %v957_v1  ;;  %v1643_v63 = vld [vmem:[%s4563_s7] sm:$0xff]  ;;  %v1645_v1 = vld [vmem:[%s4563_s7 + $0x10] sm:$0xff] }
 0x4b4   : > { %v969_v3 = vmul.f32 1.442695, %v963_v2 }
 0x4b5   : > { %v960_v4 = vpop.xlane.xlu0 %959  ;;  %v994_v5 = vpop.permute.xlu1 %993 }
 0x4b6   : > { %3753 = vpow2.f32 %v969_v3  ;;  %v964_v6 = vsub.f32 %v948_v53, %v960_v4  ;;  %3473 = vmatpush3.msra.mxu0 %v994_v5  ;;  %v1646_v3 = vld [vmem:[%s4563_s7 + $0x18] sm:$0xff]  ;;  %v1728_v5 = vld [vmem:[%s4565_s9] sm:$0xff] }
 0x4b7   : > { %3482 = vmatprep.subr.mxu0 %v3898_v13  ;;  %v3653_v4 = vpack.c.bf16 %v1646_v3, %v1645_v1 }
 0x4b8   : > { %v971_v7 = vmul.f32 1.442695, %v964_v6  ;;  %v1729_v6 = vld [vmem:[%s4565_s9 + $0x8] sm:$0xff] }
 0x4ba   : > { %3755 = vpow2.f32 %v971_v7  ;;  %v1730_v7 = vld [vmem:[%s4565_s9 + $0x10] sm:$0xff] }
 0x4bc   : > { %v3752_v8 = vpop.eup %3751 }
 0x4bd   : > { %v976_v9 = vsel %vm642_vm4, %v3752_v8, 0.0 }
 0x4be   : > { %977 = vadd.xlane.f32.xlu0 %v976_v9  ;;  %v1731_v9 = vld [vmem:[%s4565_s9 + $0x18] sm:$0xff] }
 0x4c0   : > { %v3754_v11 = vpop.eup %3753 }
 0x4c1   : > { %v979_v12 = vsel %vm642_vm4, %v3754_v11, 0.0 }
 0x4c2   : > { %980 = vadd.xlane.f32.xlu1 %v979_v12  ;;  %v1732_v12 = vld [vmem:[%s4565_s9 + $0x20] sm:$0xff] }
 0x4c4   : > { %v3756_v14 = vpop.eup %3755 }
 0x4c5   : > { %v982_v15 = vsel %vm642_vm4, %v3756_v14, 0.0 }
 0x4c6   : > { %983 = vadd.xlane.f32.xlu0 %v982_v15 }
 0x4d3   : > { %1145 = vrot.lane.b32.xlu1 %v4146_v34, %s4579_s23 }
 0x4d7   : > { %1221 = vrot.lane.b32.xlu1 %v4150_v35, %s4579_s23 }
 0x4dc   : > { %1069 = vrot.lane.b32.xlu0 %v4142_v33, %s4579_s23  ;;  %v3285_v33 = vld [vmem:[%s4559_s3 + $0x18] sm:$0xff]  ;;  %s509_s23 = scalar_lea.vmem [#allocation5], %s4605_s20 }
 0x4dd   : > { %s3186_s29 = sshll.u32 %s509_s23, 4  ;;  %s4513_s29 = int_to_ptr.vmem [resolvable:$true] %s3186_s29 }
 0x4e6   : > { %v975_v16 = vpop.xlane.xlu1 %974 }
 0x4e7   : > { %3757 = vrcp.f32 %v975_v16 }
 0x4f1   : > { %v3758_v17 = vpop.eup %3757 }
 0x4f2   : > { %v989_v18 = vmul.f32 %v3758_v17, %v3750_v59 }
 0x4f4   : > { %3475 = vmatmul.mubr.msk.f32.vlgmr.msra.gmra.mrb[6].mxu0 %vm642_vm4, %v989_v18 }
 0x4f5   : > { %3484 = vmatprep.mubr.msk.f32.mxu0 %vm3897_vm1, %v3898_v13 }
 0x54b   : > { %v978_v19 = vpop.xlane.xlu0 %977 }
 0x54c   : > { %3759 = vrcp.f32 %v978_v19 }
 0x54f   : > { %v981_v20 = vpop.xlane.xlu1 %980 }
 0x550   : > { %3761 = vrcp.f32 %v981_v20 }
 0x553   : > { %v984_v21 = vpop.xlane.xlu0 %983  ;;  %v1146_v22 = vpop.permute.xlu1 %1145 }
 0x554   : > { %3763 = vrcp.f32 %v984_v21  ;;  %3483 = vmatpush3.msra.mxu0 %v1146_v22 }
 0x555   : > { %3492 = vmatprep.subr.mxu0 %v3898_v13 }
 0x556   : > { %v3760_v23 = vpop.eup %3759 }
 0x557   : > { %v990_v24 = vmul.f32 %v3760_v23, %v3752_v8  ;;  %v1070_v25 = vpop.permute.xlu0 %1069  ;;  %v1222_v26 = vpop.permute.xlu1 %1221  ;;  %v3656_v8 = vpack.c.bf16 %v1729_v6, %v1728_v5  ;;  %v3303_v5 = vld [vmem:[%s4558_s2 + $0x1] ss:$0 sm:$0xff] }
 0x558   : > { %3478 = vmatpush3.msra.mxu1 %v1070_v25  ;;  %v3288_v25 = vld [vmem:[%s4567_s11] ss:$0 sm:$0xff] }
 0x559   : > { %3480 = vmatmul.mubr.msk.f32.vlgmr.msra.gmra.mrb[4].mxu1 %vm642_vm4, %v990_v24  ;;  %3487 = vmatprep.subr.mxu1 %v3898_v13 }
 0x55a   : > { %v3762_v27 = vpop.eup %3761  ;;  %3488 = vmatpush3.msra.mxu1 %v1222_v26  ;;  %3489 = vmatprep.mubr.msk.f32.mxu1 %vm3897_vm1, %v3898_v13 }
 0x55b   : > { %v991_v28 = vmul.f32 %v3762_v27, %v3754_v11  ;;  %3497 = vmatprep.subr.mxu1 %v3898_v13  ;;  %v3659_v11 = vpack.c.bf16 %v1731_v9, %v1730_v7  ;;  %v3289_v27 = vld [vmem:[%s4568_s12] ss:$0 sm:$0xff] }
 0x55d   : > { %3485 = vmatmul.mubr.msk.f32.vlgmr.msra.gmra.mrb[8].mxu0 %vm642_vm4, %v991_v28 }
 0x55e   : > { %v3764_v29 = vpop.eup %3763  ;;  %3494 = vmatprep.mubr.msk.f32.mxu0 %vm3897_vm1, %v3898_v13  ;;  %3493 = vmatpush3.msra.mxu0 %v3280_v32 }
 0x55f   : > { %v992_v30 = vmul.f32 %v3764_v29, %v3756_v14  ;;  %3502 = vmatprep.subr.mxu0 %v3898_v13  ;;  %v1733_v14 = vld [vmem:[%s4565_s9 + $0x28] sm:$0xff] }
 0x560   : > { %v3662_v15 = vpack.c.bf16 %v1733_v14, %v1732_v12 }
 0x561   : > { %3490 = vmatmul.mubr.msk.f32.vlgmr.msra.gmra.mrb[6].mxu1 %vm642_vm4, %v992_v30  ;;  %v1734_v30 = vld [vmem:[%s4565_s9 + $0x30] sm:$0xff] }
 0x562   : > { %3498 = vmatpush3.msra.mxu1 %v1297_v31  ;;  %3499 = vmatprep.mubr.msk.f32.mxu1 %vm3897_vm1, %v3898_v13  ;;  %v1735_v31 = vld [vmem:[%s4565_s9 + $0x38] sm:$0xff] }
 0x563   : > { %3507 = vmatprep.subr.mxu1 %v3898_v13  ;;  %v3665_v32 = vpack.c.bf16 %v1735_v31, %v1734_v30 }
 0x5c7   : > { %v1065_v34 = vpop.f32.mrb[6].mxu0 }
 0x5c8   : > { %v3476_v35 = vpop.f32.mrb[7].mxu0  ;;  %3500 = vmatmul.mubr.msk.f32.vlgmr.msra.gmra.mrb[8].mxu1 %vm642_vm4, %v1065_v34 }
 0x5c9   : > { %3508 = vmatpush3.msra.mxu1 %v3285_v33  ;;  %3509 = vmatprep.mubr.msk.f32.mxu1 %vm3897_vm1, %v3898_v13  ;;  %v3290_v33 = vld [vmem:[%s4564_s8] ss:$0 sm:$0xff] }
 0x5ca   : > { %3655 = vmatprep.subr.bf16.mxu1 %v3896_v10 }
 0x62c   : > { %v1141_v37 = vpop.f32.mrb[4].mxu1 }
 0x62d   : > { %v3481_v38 = vpop.f32.mrb[5].mxu1  ;;  %3495 = vmatmul.mubr.msk.f32.vlgmr.msra.gmra.mrb[10].mxu0 %vm642_vm4, %v1141_v37 }
 0x62e   : > { %3503 = vmatpush3.msra.mxu0 %v3283_v36  ;;  %3504 = vmatprep.mubr.msk.f32.mxu0 %vm3897_vm1, %v3898_v13 }
 0x62f   : > { %3649 = vmatprep.subr.bf16.mxu0 %v3896_v10 }
 0x630   : > { %v1217_v39 = vpop.f32.mrb[8].mxu0 }
 0x631   : > { %v3486_v40 = vpop.f32.mrb[9].mxu0  ;;  %3505 = vmatmul.mubr.msk.f32.vlgmr.msra.gmra.mrb[12].mxu0 %vm642_vm4, %v1217_v39  ;;  %v3293_v39 = vld [vmem:[%s4566_s10] ss:$0 sm:$0xff] }
 0x632   : > { %3520 = vmatprep.mubr.msk.f32.mxu0 %vm3897_vm1, %v3898_v13 }
 0x634   : > { %v1293_v41 = vpop.f32.mrb[6].mxu1 }
 0x635   : > { %v3491_v42 = vpop.f32.mrb[7].mxu1  ;;  %3510 = vmatmul.mubr.msk.f32.vlgmr.msra.gmra.mrb[10].mxu1 %vm642_vm4, %v1293_v41 }
 0x636   : > { %3539 = vmatprep.mubr.msk.f32.mxu1 %vm3897_vm1, %v3898_v13  ;;  %3657 = vmatpush3.bf16.msra.mxu1 %v3656_v8 }
 0x637   : > { %3658 = vmatprep.subr.bf16.mxu1 %v3896_v10 }
 0x63a   : > { %3660 = vmatpush3.bf16.msra.mxu1 %v3659_v11 }
 0x63b   : > { %3661 = vmatprep.subr.bf16.mxu1 %v3896_v10 }
 0x63e   : > { %3663 = vmatpush3.bf16.msra.mxu1 %v3662_v15 }
 0x63f   : > { %3664 = vmatprep.subr.bf16.mxu1 %v3896_v10 }
 0x642   : > { %3666 = vmatpush3.bf16.msra.mxu1 %v3665_v32 }
 0x643   : > { %3558 = vmatprep.subr.mxu1 %v3898_v13 }
 0x69b   : > { %v1442_v43 = vpop.f32.mrb[8].mxu1 }
 0x69c   : > { %v3501_v44 = vpop.f32.mrb[9].mxu1 }
 0x700   : > { %v1369_v45 = vpop.f32.mrb[10].mxu0 }
 0x701   : > { %v1443_v46 = vadd.f32 %v1442_v43, %v1369_v45  ;;  %v3496_v47 = vpop.f32.mrb[11].mxu0 }
 0x704   : > { %v1517_v48 = vpop.f32.mrb[12].mxu0 }
 0x705   : > { %v1521_v49 = vadd.f32 %v1517_v48, %v1443_v46  ;;  %v3506_v50 = vpop.f32.mrb[13].mxu0 }
 0x706   : > { %v3299_v50 = vld [vmem:[%s4600_s1 + $0x28] sm:$0xff] }
 0x708   : > { %v1593_v51 = vpop.f32.mrb[10].mxu1 }
 0x709   : > { %v1597_v52 = vadd.f32 %v1593_v51, %v1521_v49  ;;  %v3511_v53 = vpop.f32.mrb[11].mxu1  ;;  %v3298_v49 = vld [vmem:[%s4600_s1 + $0x20] sm:$0xff]  ;;  %v3300_v51 = vld [vmem:[%s4600_s1 + $0x30] sm:$0xff] }
 0x70a   : > { %v3301_v53 = vld [vmem:[%s4600_s1 + $0x38] sm:$0xff]  ;;  %s4511_s1 = scalar_lea.hbm %s4606_s0, %s3352_s18 }
 0x70b   : > { %v1598_v55 = vadd.f32 %v1597_v52, %v4100_v0  ;;  %v1644_v0 = vld [vmem:[%s4563_s7 + $0x8] sm:$0xff]  ;;  %v3668_v52 = vpack.c.bf16 %v3299_v50, %v3298_v49 }
 0x70c   : > { %v3650_v2 = vpack.c.bf16 %v1644_v0, %v1643_v63  ;;  %v3296_v0 = vld [vmem:[%s4561_s5 + $0x1] ss:$0 sm:$0xff] }
 0x70d   : > { %v4240_v56 = vadd.f32 %v3287_v54, %v1598_v55  ;;  %v3671_v54 = vpack.c.bf16 %v3301_v53, %v3300_v51 }
 0x70e   : > { %3651 = vmatpush3.bf16.msra.mxu0 %v3650_v2  ;;  %v3297_v2 = vld [vmem:[%s4562_s6 + $0x1] ss:$0 sm:$0xff] }
 0x70f   : > { %v1609_v57 = vsel %vm513_vm0, %v4240_v56, 0.0  ;;  %3652 = vmatprep.subr.bf16.mxu0 %v3896_v10 }
 0x710   : > { %1610 = vadd.xlane.f32.xlu0 %v1609_v57 }
 0x712   : > { %3654 = vmatpush3.bf16.msra.mxu0 %v3653_v4 }
 0x713   : > { %3667 = vmatprep.subr.bf16.mxu0 %v3896_v10 }
 0x79d   : > { %v1611_v58 = vpop.xlane.xlu0 %1610 }
 0x79e   : > { %v1612_v59 = vmul.f32 0.03125, %v1611_v58 }
 0x7a0   : > { %v1613_v60 = vsub.f32 %v4240_v56, %v1612_v59 }
 0x7a2   : > { %v1614_v61 = vmul.f32 %v1613_v60, %v1613_v60 }
 0x7a4   : > { %v1615_v62 = vsel %vm513_vm0, %v1614_v61, 0.0 }
 0x7a5   : > { %1616 = vadd.xlane.f32.xlu1 %v1615_v62 }
 0x832   : > { %v1617_v16 = vpop.xlane.xlu1 %1616 }
 0x833   : > { %v1618_v17 = vmul.f32 0.032258064, %v1617_v16 }
 0x835   : > { %3765 = vrsqrt.f32 %v1618_v17  ;;  %vm1621_vm5 = vcmp.eq.f32.partialorder %v1618_v17, inf  ;;  %v1624_v20 = vand.u32 2147483648, %v1618_v17  ;;  %vm1623_vm6 = vcmp.eq.f32.partialorder %v1618_v17, 0.0 }
 0x83f   : > { %v3766_v18 = vpop.eup %3765 }
 0x840   : > { %v1620_v19 = vmul.f32 %v3766_v18, %v1618_v17 }
 0x842   : > { %v1622_v21 = vsel %vm1621_vm5, %v1618_v17, %v1620_v19 }
 0x843   : > { %v1625_v22 = vsel %vm1623_vm6, %v1624_v20, %v1622_v21 }
 0x844   : > { %v1626_v23 = vadd.f32 1e-06, %v1625_v22 }
 0x846   : > { %3767 = vrcp.f32 %v1626_v23 }
 0x850   : > { %v3768_v24 = vpop.eup %3767 }
 0x851   : > { %v1628_v26 = vmul.f32 %v3768_v24, %v1613_v60 }
 0x853   : > { %v1635_v28 = vmul.f32 %v3288_v25, %v1628_v26 }
 0x855   : > { %v1642_v29 = vadd.f32 %v3289_v27, %v1635_v28 }
 0x857   : > { %3521 = vmatmul.mubr.msk.f32.vlgmr.msra.gmra.mrb[14].mxu0 %vm513_vm0, %v1642_v29 }
 0x858   : > { %3550 = vmatprep.mubr.msk.f32.mxu0 %vm3897_vm1, %v3898_v13  ;;  %3669 = vmatpush3.bf16.msra.mxu0 %v3668_v52 }
 0x859   : > { %3670 = vmatprep.subr.bf16.mxu0 %v3896_v10 }
 0x85c   : > { %3672 = vmatpush3.bf16.msra.mxu0 %v3671_v54 }
 0x85d   : > { %3553 = vmatprep.subr.mxu0 %v3898_v13 }
 0x92a   : > { %v1723_v34 = vpop.f32.mrb[14].mxu0 }
 0x92b   : > { %v1724_v35 = vadd.f32 %v3290_v33, %v1723_v34  ;;  %v3522_v36 = vpop.f32.mrb[15].mxu0 }
 0x92d   : > { %v1727_v37 = vmax.f32 %v1724_v35, 0.0 }
 0x92f   : > { %3540 = vmatmul.mubr.msk.f32.vlgmr.msra.gmra.mrb[12].mxu1 %vm1736_vm7, %v1727_v37 }
 0x930   : > { %3560 = vmatprep.mubr.msk.f32.mxu1 %vm3897_vm1, %v3898_v13 }
 0xa02   : > { %v1806_v38 = vpop.f32.mrb[12].mxu1 }
 0xa03   : > { %v1810_v40 = vadd.f32 %v1806_v38, %v4240_v56  ;;  %v3541_v41 = vpop.f32.mrb[13].mxu1 }
 0xa05   : > { %v4307_v42 = vadd.f32 %v3293_v39, %v1810_v40 }
 0xa07   : > { %v1823_v43 = vsel %vm513_vm0, %v4307_v42, 0.0 }
 0xa08   : > { %1824 = vadd.xlane.f32.xlu0 %v1823_v43 }
 0xa95   : > { %v1825_v44 = vpop.xlane.xlu0 %1824 }
 0xa96   : > { %v1826_v45 = vmul.f32 0.03125, %v1825_v44 }
 0xa98   : > { %v1827_v46 = vsub.f32 %v4307_v42, %v1826_v45 }
 0xa9a   : > { %v1828_v47 = vmul.f32 %v1827_v46, %v1827_v46 }
 0xa9c   : > { %v1829_v48 = vsel %vm513_vm0, %v1828_v47, 0.0 }
 0xa9d   : > { %1830 = vadd.xlane.f32.xlu0 %v1829_v48 }
 0xb2a   : > { %v1831_v55 = vpop.xlane.xlu0 %1830 }
 0xb2b   : > { %v1832_v56 = vmul.f32 0.032258064, %v1831_v55 }
 0xb2d   : > { %3769 = vrsqrt.f32 %v1832_v56  ;;  %vm1835_vm8 = vcmp.eq.f32.partialorder %v1832_v56, inf  ;;  %v1838_v59 = vand.u32 2147483648, %v1832_v56  ;;  %vm1837_vm9 = vcmp.eq.f32.partialorder %v1832_v56, 0.0 }
 0xb37   : > { %v3770_v57 = vpop.eup %3769 }
 0xb38   : > { %v1834_v58 = vmul.f32 %v3770_v57, %v1832_v56 }
 0xb3a   : > { %v1836_v60 = vsel %vm1835_vm8, %v1832_v56, %v1834_v58 }
 0xb3b   : > { %v1839_v61 = vsel %vm1837_vm9, %v1838_v59, %v1836_v60 }
 0xb3c   : > { %v1840_v62 = vadd.f32 1e-06, %v1839_v61 }
 0xb3e   : > { %3771 = vrcp.f32 %v1840_v62 }
 0xb48   : > { %v3772_v63 = vpop.eup %3771 }
 0xb49   : > { %v1842_v1 = vmul.f32 %v3772_v63, %v1827_v46 }
 0xb4b   : > { %v1849_v3 = vmul.f32 %v3296_v0, %v1842_v1 }
 0xb4d   : > { %v1856_v4 = vadd.f32 %v3297_v2, %v1849_v3 }
 0xb4f   : > { %3551 = vmatmul.mubr.msk.f32.vlgmr.msra.gmra.mrb[16].mxu0 %vm513_vm0, %v1856_v4 }
 0xb50   : > { %3555 = vmatprep.mubr.msk.f32.mxu0 %vm3897_vm1, %v3898_v13 }
 0xc22   : > { %v1939_v6 = vpop.f32.mrb[16].mxu0 }
 0xc23   : > { %v1940_v7 = vadd.f32 %v3303_v5, %v1939_v6  ;;  %v3552_v8 = vpop.f32.mrb[17].mxu0  ;;  %v3317_v6 = vld [vmem:[%s4559_s3 + $0x20] sm:$0xff] }
 0xc24   : > { %v3318_v8 = vld [vmem:[%s4559_s3 + $0x28] sm:$0xff] }
 0xc25   : > { %1946 = vrot.lane.b32.xlu0 %v1940_v7, %s3901_s25  ;;  %1944 = vrot.lane.b32.xlu1 %v1940_v7, %s3900_s28  ;;  %s4603_s28 = smov 64   ;;  %s3831_s25 = sshll.u32 %s3904_s22, 4  ;;  %s3832_s25 = int_to_ptr.vmem [resolvable:$false] %s3831_s25 }
 0xc26   : > { %s3833_s15 = scalar_lea.vmem %s3832_s25, 256  ;;  %p3834_p7 = scmp.lt.s32.totalorder %s4513_s29, %s3832_s25 }
 0xc29   : > { %1948 = vrot.lane.b32.xlu1 %v1940_v7, %s4601_s14 }
 0xc2d   : > { %1950 = vrot.lane.b32.xlu1 %v1940_v7, %s4602_s17 }
 0xc97   : > { %v4343_v9 = vpop.permute.xlu0 %1946  ;;  %v1945_v11 = vpop.permute.xlu1 %1944 }
 0xc98   : > { %2102 = vrot.lane.b32.xlu1 %v4343_v9, %s4602_s17  ;;  %2026 = vrot.lane.b32.xlu0 %v1945_v11, %s4602_s17 }
 0xc9b   : > { %v4348_v12 = vpop.permute.xlu1 %1948 }
 0xc9c   : > { %2178 = vrot.lane.b32.xlu0 %v4348_v12, %s4602_s17  ;;  %s3173_s17 = scalar_lea.sflag [#allocation4], %s4090_s27 }
 0xc9f   : > { %v1951_v14 = vpop.permute.xlu1 %1950 }
 0xca0   : > { %3554 = vmatpush3.xpose.msk.msra.mxu0 %vm642_vm4, %v1951_v14  ;;  %v3321_v14 = vld [vmem:[%s4559_s3 + $0x30] sm:$0xff] }
 0xca1   : > { %3563 = vmatprep.subr.mxu0 %v3898_v13 }
 0xca3   : > { %3556 = vmatmul.mubr.msk.f32.vlgmr.msra.gmra.mrb[18].mxu0 %vm642_vm4, %v1940_v7 }
 0xca4   : > { %3565 = vmatprep.mubr.msk.f32.mxu0 %vm3897_vm1, %v3898_v13 }
 0xd0a   : > { %v2027_v15 = vpop.permute.xlu0 %2026  ;;  %v2103_v16 = vpop.permute.xlu1 %2102 }
 0xd0b   : > { %3559 = vmatpush3.xpose.msk.msra.mxu1 %vm642_vm4, %v2027_v15  ;;  %3564 = vmatpush3.xpose.msk.msra.mxu0 %vm642_vm4, %v2103_v16 }
 0xd0c   : > { %3568 = vmatprep.subr.mxu1 %v3898_v13  ;;  %3573 = vmatprep.subr.mxu0 %v3898_v13 }
 0xd0e   : > { %3561 = vmatmul.mubr.msk.f32.vlgmr.msra.gmra.mrb[14].mxu1 %vm642_vm4, %v1945_v11  ;;  %v2179_v17 = vpop.permute.xlu0 %2178  ;;  %3566 = vmatmul.mubr.msk.f32.vlgmr.msra.gmra.mrb[20].mxu0 %vm642_vm4, %v4343_v9 }
 0xd0f   : > { %3569 = vmatpush3.xpose.msk.msra.mxu1 %vm642_vm4, %v2179_v17  ;;  %3570 = vmatprep.mubr.msk.f32.mxu1 %vm3897_vm1, %v3898_v13 }
 0xd10   : > { %3578 = vmatprep.subr.mxu1 %v3898_v13  ;;  %3575 = vmatprep.mubr.msk.f32.mxu0 %vm3897_vm1, %v3898_v13 }
 0xd12   : > { %3571 = vmatmul.mubr.msk.f32.vlgmr.msra.gmra.mrb[16].mxu1 %vm642_vm4, %v4348_v12 }
 0xd13   : > { %3580 = vmatprep.mubr.msk.f32.mxu1 %vm3897_vm1, %v3898_v13 }
 0xd76   : > { %v2022_v18 = vpop.f32.mrb[18].mxu0 }
 0xd77   : > { %v2254_v19 = vmul.f32 0.35355338, %v2022_v18  ;;  %v3557_v20 = vpop.f32.mrb[19].mxu0 }
 0xd79   : > { %v2258_v21 = vsel %vm642_vm4, %v2254_v19, -inf }
 0xd7a   : > { %2259 = vmax.xlane.f32.xlu1 %v2258_v21 }
 0xde1   : > { %v2098_v22 = vpop.f32.mrb[14].mxu1  ;;  %v2174_v23 = vpop.f32.mrb[20].mxu0 }
 0xde2   : > { %v2255_v24 = vmul.f32 0.35355338, %v2098_v22  ;;  %v3562_v25 = vpop.f32.mrb[15].mxu1  ;;  %v3567_v26 = vpop.f32.mrb[21].mxu0  ;;  %v2256_v27 = vmul.f32 0.35355338, %v2174_v23 }
 0xde4   : > { %v2261_v28 = vsel %vm642_vm4, %v2255_v24, -inf  ;;  %v2264_v33 = vsel %vm642_vm4, %v2256_v27, -inf }
 0xde5   : > { %2262 = vmax.xlane.f32.xlu0 %v2261_v28  ;;  %v2250_v29 = vpop.f32.mrb[16].mxu1 }
 0xde6   : > { %v2257_v30 = vmul.f32 0.35355338, %v2250_v29  ;;  %v3572_v31 = vpop.f32.mrb[17].mxu1 }
 0xde8   : > { %v2267_v32 = vsel %vm642_vm4, %v2257_v30, -inf }
 0xde9   : > { %2268 = vmax.xlane.f32.xlu1 %v2267_v32  ;;  %2265 = vmax.xlane.f32.xlu0 %v2264_v33  ;;  %v3326_v32 = vld [vmem:[%s4560_s4 + $0x1] ss:$0 sm:$0xff] }
 0xdfa   : > { %2378 = vrot.lane.b32.xlu1 %v1945_v11, %s4603_s28 }
 0xdff   : > { %2302 = vrot.lane.b32.xlu0 %v1940_v7, %s4603_s28 }
 0xe07   : > { %v2260_v34 = vpop.xlane.xlu1 %2259 }
 0xe08   : > { %v2270_v35 = vsub.f32 %v2254_v19, %v2260_v34 }
 0xe0a   : > { %v2274_v36 = vmul.f32 1.442695, %v2270_v35 }
 0xe0c   : > { %3773 = vpow2.f32 %v2274_v36 }
 0xe16   : > { %v3774_v37 = vpop.eup %3773 }
 0xe17   : > { %v2282_v38 = vsel %vm642_vm4, %v3774_v37, 0.0 }
 0xe1e   : > { %2283 = vadd.xlane.f32.xlu0 %v2282_v38 }
 0xe72   : > { %v2263_v39 = vpop.xlane.xlu0 %2262 }
 0xe73   : > { %v2271_v40 = vsub.f32 %v2255_v24, %v2263_v39 }
 0xe75   : > { %v2276_v41 = vmul.f32 1.442695, %v2271_v40  ;;  %v3331_v40 = vld [vmem:[%s4563_s7 + $0x20] sm:$0xff] }
 0xe76   : > { %v2269_v43 = vpop.xlane.xlu1 %2268  ;;  %v2266_v44 = vpop.xlane.xlu0 %2265 }
 0xe77   : > { %3775 = vpow2.f32 %v2276_v41  ;;  %v2273_v45 = vsub.f32 %v2257_v30, %v2269_v43  ;;  %v2272_v46 = vsub.f32 %v2256_v27, %v2266_v44  ;;  %v3333_v41 = vld [vmem:[%s4563_s7 + $0x30] sm:$0xff]  ;;  %v3334_v44 = vld [vmem:[%s4563_s7 + $0x38] sm:$0xff] }
 0xe79   : > { %v2280_v47 = vmul.f32 1.442695, %v2273_v45  ;;  %v2278_v48 = vmul.f32 1.442695, %v2272_v46  ;;  %v3677_v45 = vpack.c.bf16 %v3334_v44, %v3333_v41  ;;  %v3338_v46 = vld [vmem:[%s4565_s9 + $0x40] sm:$0xff] }
 0xe7a   : > { %v2379_v49 = vpop.permute.xlu1 %2378  ;;  %v2303_v50 = vpop.permute.xlu0 %2302 }
 0xe7b   : > { %3777 = vpow2.f32 %v2280_v47  ;;  %3574 = vmatpush3.msra.mxu0 %v2303_v50  ;;  %3579 = vmatpush3.msra.mxu1 %v2379_v49  ;;  %v3339_v47 = vld [vmem:[%s4565_s9 + $0x48] sm:$0xff]  ;;  %v3341_v50 = vld [vmem:[%s4565_s9 + $0x58] sm:$0xff] }
 0xe7c   : > { %3779 = vpow2.f32 %v2278_v48  ;;  %3583 = vmatprep.subr.mxu0 %v3898_v13  ;;  %3588 = vmatprep.subr.mxu1 %v3898_v13  ;;  %v3340_v48 = vld [vmem:[%s4565_s9 + $0x50] sm:$0xff]  ;;  %v3680_v49 = vpack.c.bf16 %v3339_v47, %v3338_v46 }
 0xe81   : > { %v3776_v51 = vpop.eup %3775 }
 0xe82   : > { %v2285_v52 = vsel %vm642_vm4, %v3776_v51, 0.0 }
 0xe83   : > { %2286 = vadd.xlane.f32.xlu1 %v2285_v52  ;;  %v3342_v52 = vld [vmem:[%s4565_s9 + $0x60] sm:$0xff] }
 0xe85   : > { %v3778_v53 = vpop.eup %3777 }
 0xe86   : > { %v3780_v54 = vpop.eup %3779  ;;  %v2291_v55 = vsel %vm642_vm4, %v3778_v53, 0.0 }
 0xe87   : > { %2292 = vadd.xlane.f32.xlu1 %v2291_v55  ;;  %v2288_v56 = vsel %vm642_vm4, %v3780_v54, 0.0 }
 0xe88   : > { %2289 = vadd.xlane.f32.xlu0 %v2288_v56 }
 0xe98   : > { %2454 = vrot.lane.b32.xlu1 %v4343_v9, %s4603_s28  ;;  %v3323_v9 = vld [vmem:[%s4559_s3 + $0x38] sm:$0xff] }
 0xe9e   : > { %2530 = vrot.lane.b32.xlu0 %v4348_v12, %s4603_s28  ;;  %s3827_s28 = scalar_lea.vmem %s4513_s29, 128 }
 0xe9f   : > { %p3828_p6 = scmp.ne.s32.totalorder %s4513_s29, %s3827_s28  ;;  %p3835_p10 = scmp.lt.s32.totalorder %s3833_s15, %s3827_s28 }
 0xea1   : > { %p3829_p12 = pnand %p3828_p6, %p4607_p11  ;;  %p3836_p2 = por %p3835_p10, %p3834_p7 }
 0xea3   : > { %p3830_p13 = pneg %p3829_p12 }
 0xea5   : > { %p3837_p4 = pnand %p3836_p2, %p3830_p13 }
 0xeab   : > { %v2284_v57 = vpop.xlane.xlu0 %2283 }
 0xeac   : > { %3781 = vrcp.f32 %v2284_v57 }
 0xeb6   : > { %v3782_v58 = vpop.eup %3781 }
 0xeb7   : > { %v2298_v59 = vmul.f32 %v3782_v58, %v3774_v37 }
 0xeb9   : > { %3576 = vmatmul.mubr.msk.f32.vlgmr.msra.gmra.mrb[22].mxu0 %vm642_vm4, %v2298_v59 }
 0xeba   : > { %3585 = vmatprep.mubr.msk.f32.mxu0 %vm3897_vm1, %v3898_v13 }
 0xf10   : > { %v2287_v60 = vpop.xlane.xlu1 %2286 }
 0xf11   : > { %3783 = vrcp.f32 %v2287_v60 }
 0xf14   : > { %v2293_v61 = vpop.xlane.xlu1 %2292 }
 0xf15   : > { %3785 = vrcp.f32 %v2293_v61  ;;  %v2290_v62 = vpop.xlane.xlu0 %2289 }
 0xf16   : > { %3787 = vrcp.f32 %v2290_v62 }
 0xf18   : > { %v2455_v63 = vpop.permute.xlu1 %2454 }
 0xf19   : > { %3584 = vmatpush3.msra.mxu0 %v2455_v63  ;;  %v2531_v2 = vpop.permute.xlu0 %2530 }
 0xf1a   : > { %3593 = vmatprep.subr.mxu0 %v3898_v13 }
 0xf1b   : > { %v3784_v0 = vpop.eup %3783 }
 0xf1c   : > { %v2299_v1 = vmul.f32 %v3784_v0, %v3776_v51  ;;  %v3683_v51 = vpack.c.bf16 %v3341_v50, %v3340_v48  ;;  %v3329_v0 = vld [vmem:[%s4567_s11 + $0x1] ss:$0 sm:$0xff] }
 0xf1e   : > { %3581 = vmatmul.mubr.msk.f32.vlgmr.msra.gmra.mrb[18].mxu1 %vm642_vm4, %v2299_v1 }
 0xf1f   : > { %v3786_v3 = vpop.eup %3785  ;;  %3589 = vmatpush3.msra.mxu1 %v2531_v2  ;;  %3590 = vmatprep.mubr.msk.f32.mxu1 %vm3897_vm1, %v3898_v13 }
 0xf20   : > { %v3788_v4 = vpop.eup %3787  ;;  %v2301_v5 = vmul.f32 %v3786_v3, %v3778_v53  ;;  %3598 = vmatprep.subr.mxu1 %v3898_v13  ;;  %v3343_v53 = vld [vmem:[%s4565_s9 + $0x68] sm:$0xff] }
 0xf21   : > { %v2300_v7 = vmul.f32 %v3788_v4, %v3780_v54  ;;  %v3686_v54 = vpack.c.bf16 %v3343_v53, %v3342_v52  ;;  %v3344_v4 = vld [vmem:[%s4565_s9 + $0x70] sm:$0xff] }
 0xf22   : > { %3591 = vmatmul.mubr.msk.f32.vlgmr.msra.gmra.mrb[20].mxu1 %vm642_vm4, %v2301_v5  ;;  %v3345_v5 = vld [vmem:[%s4565_s9 + $0x78] sm:$0xff] }
 0xf23   : > { %3586 = vmatmul.mubr.msk.f32.vlgmr.msra.gmra.mrb[24].mxu0 %vm642_vm4, %v2300_v7  ;;  %3599 = vmatpush3.msra.mxu1 %v3317_v6  ;;  %v3689_v6 = vpack.c.bf16 %v3345_v5, %v3344_v4  ;;  %v3336_v7 = vld [vmem:[%s4564_s8 + $0x1] ss:$0 sm:$0xff] }
 0xf24   : > { %3600 = vmatprep.mubr.msk.f32.mxu1 %vm3897_vm1, %v3898_v13  ;;  %3594 = vmatpush3.msra.mxu0 %v3318_v8 }
 0xf25   : > { %3595 = vmatprep.mubr.msk.f32.mxu0 %vm3897_vm1, %v3898_v13  ;;  %3603 = vmatprep.subr.mxu0 %v3898_v13 }
 0xf26   : > { %3608 = vmatprep.subr.mxu1 %v3898_v13 }
 0xf8c   : > { %v2374_v11 = vpop.f32.mrb[22].mxu0 }
 0xf8d   : > { %v3577_v12 = vpop.f32.mrb[23].mxu0  ;;  %3601 = vmatmul.mubr.msk.f32.vlgmr.msra.gmra.mrb[22].mxu1 %vm642_vm4, %v2374_v11 }
 0xf8e   : > { %3609 = vmatpush3.msra.mxu1 %v3323_v9  ;;  %3610 = vmatprep.mubr.msk.f32.mxu1 %vm3897_vm1, %v3898_v13 }
 0xf8f   : > { %3679 = vmatprep.subr.bf16.mxu1 %v3896_v10 }
 0xff1   : > { %v2450_v15 = vpop.f32.mrb[18].mxu1 }
 0xff2   : > { %v3582_v16 = vpop.f32.mrb[19].mxu1  ;;  %3596 = vmatmul.mubr.msk.f32.vlgmr.msra.gmra.mrb[26].mxu0 %vm642_vm4, %v2450_v15  ;;  %v3348_v15 = vld [vmem:[%s4566_s10 + $0x1] ss:$0 sm:$0xff] }
 0xff3   : > { %3604 = vmatpush3.msra.mxu0 %v3321_v14  ;;  %3605 = vmatprep.mubr.msk.f32.mxu0 %vm3897_vm1, %v3898_v13 }
 0xff4   : > { %3673 = vmatprep.subr.bf16.mxu0 %v3896_v10 }
 0xff5   : > { %v2602_v17 = vpop.f32.mrb[20].mxu1 }
 0xff6   : > { %v2526_v18 = vpop.f32.mrb[24].mxu0  ;;  %v3592_v19 = vpop.f32.mrb[21].mxu1  ;;  %3611 = vmatmul.mubr.msk.f32.vlgmr.msra.gmra.mrb[24].mxu1 %vm642_vm4, %v2602_v17 }
 0xff7   : > { %v3587_v20 = vpop.f32.mrb[25].mxu0  ;;  %3606 = vmatmul.mubr.msk.f32.vlgmr.msra.gmra.mrb[28].mxu0 %vm642_vm4, %v2526_v18  ;;  %3640 = vmatprep.mubr.msk.f32.mxu1 %vm3897_vm1, %v3898_v13 }
 0xff8   : > { %3621 = vmatprep.mubr.msk.f32.mxu0 %vm3897_vm1, %v3898_v13  ;;  %3681 = vmatpush3.bf16.msra.mxu1 %v3680_v49 }
 0xff9   : > { %3682 = vmatprep.subr.bf16.mxu1 %v3896_v10 }
 0xffc   : > { %3684 = vmatpush3.bf16.msra.mxu1 %v3683_v51 }
 0xffd   : > { %3685 = vmatprep.subr.bf16.mxu1 %v3896_v10 }
0x1000   : > { %3687 = vmatpush3.bf16.msra.mxu1 %v3686_v54 }
0x1001   : > { %3688 = vmatprep.subr.bf16.mxu1 %v3896_v10 }
0x1004   : > { %3690 = vmatpush3.bf16.msra.mxu1 %v3689_v6 }
0x1060   : > { %v2752_v21 = vpop.f32.mrb[22].mxu1 }
0x1061   : > { %v3602_v22 = vpop.f32.mrb[23].mxu1 }
0x10c5   : > { %v2679_v23 = vpop.f32.mrb[26].mxu0 }
0x10c6   : > { %v2753_v24 = vadd.f32 %v2752_v21, %v2679_v23  ;;  %v3597_v25 = vpop.f32.mrb[27].mxu0 }
0x10c9   : > { %v2903_v26 = vpop.f32.mrb[24].mxu1 }
0x10ca   : > { %v2827_v27 = vpop.f32.mrb[28].mxu0  ;;  %v3612_v28 = vpop.f32.mrb[25].mxu1 }
0x10cb   : > { %v2831_v29 = vadd.f32 %v2827_v27, %v2753_v24  ;;  %v3607_v30 = vpop.f32.mrb[29].mxu0 }
0x10cd   : > { %v2907_v31 = vadd.f32 %v2903_v26, %v2831_v29 }
0x10cf   : > { %v2908_v33 = vadd.f32 %v2907_v31, %v4307_v42  ;;  %v3332_v42 = vld [vmem:[%s4563_s7 + $0x28] sm:$0xff] }
0x10d0   : > { %v3674_v43 = vpack.c.bf16 %v3332_v42, %v3331_v40 }
0x10d1   : > { %v4436_v34 = vadd.f32 %v3326_v32, %v2908_v33 }
0x10d2   : > { %3675 = vmatpush3.bf16.msra.mxu0 %v3674_v43 }
0x10d3   : > { %v2922_v13 = vsel %vm513_vm0, %v4436_v34, 0.0  ;;  %3676 = vmatprep.subr.bf16.mxu0 %v3896_v10  ;;  %v3330_v10 = vld [vmem:[%s4568_s12 + $0x1] ss:$0 sm:$0xff] }
0x10d4   : > { %2923 = vadd.xlane.f32.xlu1 %v2922_v13 }
0x10d6   : > { %3678 = vmatpush3.bf16.msra.mxu0 %v3677_v45 }
0x1161   : > { %v2924_v35 = vpop.xlane.xlu1 %2923 }
0x1162   : > { %v2925_v36 = vmul.f32 0.03125, %v2924_v35  ;;  %v3350_v35 = vld [vmem:[%s4604_s26] ss:$0 sm:$0xff] }
0x1164   : > { %v2926_v37 = vsub.f32 %v4436_v34, %v2925_v36 }
0x1166   : > { %v2927_v38 = vmul.f32 %v2926_v37, %v2926_v37 }
0x1168   : > { %v2928_v39 = vsel %vm513_vm0, %v2927_v38, 0.0 }
0x1169   : > { %2929 = vadd.xlane.f32.xlu0 %v2928_v39 }
0x11f6   : > { %v2930_v55 = vpop.xlane.xlu0 %2929 }
0x11f7   : > { %v2931_v56 = vmul.f32 0.032258064, %v2930_v55 }
0x11f9   : > { %3789 = vrsqrt.f32 %v2931_v56  ;;  %vm2934_vm10 = vcmp.eq.f32.partialorder %v2931_v56, inf  ;;  %v2937_v59 = vand.u32 2147483648, %v2931_v56  ;;  %vm2936_vm11 = vcmp.eq.f32.partialorder %v2931_v56, 0.0 }
0x1203   : > { %v3790_v57 = vpop.eup %3789 }
0x1204   : > { %v2933_v58 = vmul.f32 %v3790_v57, %v2931_v56 }
0x1206   : > { %v2935_v60 = vsel %vm2934_vm10, %v2931_v56, %v2933_v58 }
0x1207   : > { %v2938_v61 = vsel %vm2936_vm11, %v2937_v59, %v2935_v60 }
0x1208   : > { %v2939_v62 = vadd.f32 1e-06, %v2938_v61 }
0x120a   : > { %3791 = vrcp.f32 %v2939_v62 }
0x1214   : > { %v3792_v63 = vpop.eup %3791 }
0x1215   : > { %v2941_v1 = vmul.f32 %v3792_v63, %v2926_v37 }
0x1217   : > { %v2948_v2 = vmul.f32 %v3329_v0, %v2941_v1 }
0x1219   : > { %v2955_v3 = vadd.f32 %v3330_v10, %v2948_v2 }
0x121b   : > { %3622 = vmatmul.mubr.msk.f32.vlgmr.msra.gmra.mrb[30].mxu0 %vm513_vm0, %v2955_v3 }
0x12ee   : > { %v3038_v8 = vpop.f32.mrb[30].mxu0 }
0x12ef   : > { %v3039_v9 = vadd.f32 %v3336_v7, %v3038_v8  ;;  %v3623_v11 = vpop.f32.mrb[31].mxu0 }
0x12f1   : > { %v3042_v12 = vmax.f32 %v3039_v9, 0.0 }
0x12f3   : > { %3641 = vmatmul.mubr.msk.f32.vlgmr.msra.gmra.mrb[26].mxu1 %vm1736_vm7, %v3042_v12 }
0x13c6   : > { %v3121_v14 = vpop.f32.mrb[26].mxu1 }
0x13c7   : > { %v3125_v16 = vadd.f32 %v3121_v14, %v4436_v34  ;;  %v3642_v17 = vpop.f32.mrb[27].mxu1  ;;  %v3349_v34 = vld [vmem:[%s4569_s13] ss:$0 sm:$0xff] }
0x13c9   : > { %v3134_v18 = vadd.f32 %v3348_v15, %v3125_v16 }
0x13cb   : > { %v3137_v19 = vsel %vm513_vm0, %v3134_v18, 0.0 }
0x13cc   : > { %3138 = vadd.xlane.f32.xlu0 %v3137_v19 }
0x1459   : > { %v3139_v20 = vpop.xlane.xlu0 %3138 }
0x145a   : > { %v3140_v21 = vmul.f32 0.03125, %v3139_v20 }
0x145c   : > { %v3141_v22 = vsub.f32 %v3134_v18, %v3140_v21 }
0x145e   : > { %v3142_v23 = vmul.f32 %v3141_v22, %v3141_v22 }
0x1460   : > { %v3143_v24 = vsel %vm513_vm0, %v3142_v23, 0.0 }
0x1461   : > { %3144 = vadd.xlane.f32.xlu1 %v3143_v24 }
0x14ee   : > { %v3145_v25 = vpop.xlane.xlu1 %3144 }
0x14ef   : > { %v3146_v26 = vmul.f32 0.032258064, %v3145_v25 }
0x14f1   : > { %3793 = vrsqrt.f32 %v3146_v26  ;;  %vm3149_vm12 = vcmp.eq.f32.partialorder %v3146_v26, inf  ;;  %v3152_v29 = vand.u32 2147483648, %v3146_v26  ;;  %vm3151_vm13 = vcmp.eq.f32.partialorder %v3146_v26, 0.0 }
0x14fb   : > { %v3794_v27 = vpop.eup %3793 }
0x14fc   : > { %v3148_v28 = vmul.f32 %v3794_v27, %v3146_v26 }
0x14fe   : > { %v3150_v30 = vsel %vm3149_vm12, %v3146_v26, %v3148_v28 }
0x14ff   : > { %v3153_v31 = vsel %vm3151_vm13, %v3152_v29, %v3150_v30 }
0x1500   : > { %v3154_v32 = vadd.f32 1e-06, %v3153_v31 }
0x1502   : > { %3795 = vrcp.f32 %v3154_v32 }
0x150c   : > { %v3796_v33 = vpop.eup %3795 }
0x150d   : > { %v3156_v13 = vmul.f32 %v3796_v33, %v3141_v22 }
0x150f   : > { %v3163_v36 = vmul.f32 %v3349_v34, %v3156_v13 }
0x1511   : > { %v3170_v37 = vadd.f32 %v3350_v35, %v3163_v36 }
0x1513   : > { %3171 = vst.msk [vmem:[%s509_s23] sm:$0xff] %vm513_vm0, %v3170_v37 }
0x1514   : > { %3840 = shalt.err (!%p3837_p4)
}
0x1515   : > { %s3841_s27 = scalar_lea.hbm %s4511_s1, 128  ;;  %s3845_s20 = scalar_lea.hbm %s4606_s0, 256 }
0x1516   : > { %p3842_p5 = scmp.ne.s32.totalorder %s4511_s1, %s3841_s27  ;;  %p3846_p0 = scmp.lt.u32.totalorder %s4511_s1, %s4606_s0 }
0x1517   : > { %p3847_p1 = scmp.lt.u32.totalorder %s3845_s20, %s3841_s27  ;;  %p3849_p6 = scmp.lt.u32.totalorder %s3841_s27, %s4511_s1 }
0x1518   : > { %p3843_p8 = pnand %p3842_p5, %p4607_p11 }
0x1519   : > { %p3848_p3 = por %p3847_p1, %p3846_p0 }
0x151a   : > { %p3844_p9 = pneg %p3843_p8 }
0x151b   : > { %p3850_p12 = por %p3849_p6, %p3848_p3 }
0x151d   : > { %p3851_p13 = pnand %p3850_p12, %p3844_p9 }
0x151f   : > { %3854 = shalt.err (!%p3851_p13)
}
0x1520   : > { %3693 = dma.vmem_to_hbm [thread:$0]  (%p4607_p11), %s4513_s29, 128, %s4511_s1, %s3173_s17  }
0x1521 PF: > { %s4608_s14 = sld [smem:[#allocation8_spill]]  ;;  %p4609_p7 = scmp.ne.s32.totalorder %s4595_s16, 0 }
0x1522   : > { %p4610_p10 = scmp.ge.s32.totalorder %s3893_s21, 2 }
0x1524   : > { %p3700_p2 = pnand %p4610_p10, %p4609_p7 }
0x1527   : > { %s3198_s28 = sand.u32 1, %s4608_s14  }
0x1528   : > { %s3199_s22 = scalar_lea.sflag [#allocation4], %s3198_s28 }
0x1529   : > { %3876 = dma.done.wait (!%p3700_p2), %s3199_s22, 128  }
0x152a   : > { %3878 = vsyncadd (!%p3700_p2), %s3199_s22, 4294967168  ;;  %s4611_s21 = sld [smem:[#allocation10_spill]]  ;;  %s4612_s25 = sld [smem:[#allocation9_spill]] }
0x152b   : > { %s4613_s20 = sld [smem:[#allocation11_spill]]  ;;  %s4614_s18 = smov %s3885_s19 }
0x1530   : > { %p28_p4 = scmp.ge.s32.totalorder %s4611_s21, 4   ;;  %s4615_s19 = smov %s4612_s25 }
0x1532   :  { %30 = sbr.rel (!%p28_p4) target bundleno = 10 (0xa), region = 143 }
0x1539   :  { %3204 = vsyncpa [#allocation3], 1 }
0x153a   :  { %3206 = vsyncpa [#allocation3 + $0x1], 1 }
0x153b   :  { %3207 = vsyncpa [#allocation4], 1 }
0x153c   :  { %3209 = vsyncpa [#allocation4 + $0x1], 1 }

</bundles_post_ra>
